<compile_context>
chip_gen: v6e
topology: v6e:2x2x1
jax: 0.10.0
libtpu: 0.0.40
codegen_flags: <defaults>
</compile_context>

<pallas_src>
import math

import jax
import jax.numpy as jnp
from jax.experimental import pallas as pl
from jax.experimental.pallas import tpu as pltpu


# ----------------------------------------------------------------------------
# Fused kernel
# ----------------------------------------------------------------------------
def make_fused_kernel(n_layers, T, B, H):
    """Kernel args (in order):
      x_ref:     (T*B, H)             bf16  time-major input, features zero-padded to H
      w_rec_ref: (n_layers, 2H, 4H)   bf16  rows [0:H] = W_ih_l^T, rows [H:2H] = W_hh_l^T
                                            (gate cols i|f|g|o; g block pre-scaled by 2)
      p_ref:     (n_layers+T+1, 4H)   f32   rows [0:n_layers]   = b_ih+b_hh per layer
                                            rows [n_layers:+T]  = head weight (T,H) lane-padded
                                            last row lane 0     = head bias
      out_ref:   (B, 1)               f32
    """

    def kernel(x_ref, w_rec_ref, p_ref, out_ref):
        # ---- load all parameters once; they stay vreg/VMEM resident across the unrolled loops
        w_all = [w_rec_ref[l] for l in range(n_layers)]       # (2H, 4H) bf16 each
        w_ih = [w[0:H, :] for w in w_all]
        w_hh = [w[H:2 * H, :] for w in w_all]
        p = p_ref[...]                                         # (n_layers+T+1, 4H) f32
        bias = [p[l:l + 1, :] for l in range(n_layers)]        # (1, 4H)
        w_head = p[n_layers:n_layers + T, :]                   # (T, 4H) (lanes H:4H are zero)
        b_out = p[n_layers + T:n_layers + T + 1, 0:1]          # (1, 1)

        # ---- hoisted layer-0 input projection for ALL timesteps: one off-chain MXU push
        xg0 = jnp.dot(x_ref[...], w_ih[0],
                      preferred_element_type=jnp.float32) + bias[0]   # (T*B, 4H) f32

        zero = jnp.zeros((B, H), jnp.float32)
        h = [zero] * n_layers
        c = [zero] * n_layers
        h_b = [jnp.zeros((B, H), jnp.bfloat16)] * n_layers
        acc = jnp.zeros((B, H), jnp.float32)      # fused linear-head accumulator

        # Fully unrolled time & layer loops -> one basic block; LLO overlaps MXU/EUP/VPU.
        for t in range(T):
            for l in range(n_layers):
                if l == 0:
                    # Input path precomputed -> only the recurrent dot sits on the h/c chain.
                    pre = xg0[t * B:(t + 1) * B, :] + jnp.dot(
                        h_b[0], w_hh[0], preferred_element_type=jnp.float32)
                else:
                    # Single fused expression: both dots can accumulate in the MXU result
                    # buffer (MRB) on v7x before a single pop.
                    pre = (jnp.dot(h_b[l - 1], w_ih[l], preferred_element_type=jnp.float32)
                           + jnp.dot(h_b[l], w_hh[l], preferred_element_type=jnp.float32)
                           + bias[l])

                # One EUP dispatch over all 4H lanes; the g block was pre-scaled by 2 at
                # prep time so tanh(z) = 2*sigmoid(2z) - 1 is a cheap VPU fixup.
                s = jax.nn.sigmoid(pre)
                i_g = s[:, 0:H]
                f_g = s[:, H:2 * H]
                g_g = 2.0 * s[:, 2 * H:3 * H] - 1.0
                o_g = s[:, 3 * H:4 * H]

                c[l] = f_g * c[l] + i_g * g_g
                h[l] = o_g * jnp.tanh(c[l])             # second (and last) transcendental
                h_b[l] = h[l].astype(jnp.bfloat16)      # one bf16 pack per layer-step

            # Fused head: out[b] += sum_j h_t[b, j] * W_lin[0, t*H + j]
            acc = acc + h[-1] * w_head[t:t + 1, 0:H]

        out_ref[...] = jnp.sum(acc, axis=1, keepdims=True) + b_out

    return kernel


# ----------------------------------------------------------------------------
# Wrapper
# ----------------------------------------------------------------------------
_VMEM_SPEC = pl.BlockSpec(memory_space=pltpu.MemorySpace.VMEM)


@jax.jit
def mood_prediction_forward(x, w_rec, p_f32):
    """x: (B, T, F) batch-first, like the PyTorch module. Returns (B, 1) f32."""
    B, T, F = x.shape
    n_layers = w_rec.shape[0]
    H = w_rec.shape[1] // 2
    assert F <= H

    # Time-major flatten + zero-pad features to H columns (cheap XLA prep, off the kernel's
    # critical path) so the hoisted layer-0 projection is one aligned (T*B,H)x(H,4H) bf16 push.
    x2d = jnp.transpose(x, (1, 0, 2)).reshape(T * B, F)
    x2d = jnp.pad(x2d, ((0, 0), (0, H - F))).astype(jnp.bfloat16)

    # Advisory cost estimate so XLA schedules neighbors around the tiny custom call.
    ce = pl.CostEstimate(
        flops=2 * T * B * (2 * n_layers) * H * 4 * H + 2 * T * B * H * 4 * H,
        transcendentals=T * n_layers * B * 5 * H,
        bytes_accessed=int(x2d.size) * 2 + int(w_rec.size) * 2 + int(p_f32.size) * 4 + B * 4,
    )

    return pl.pallas_call(
        make_fused_kernel(n_layers, T, B, H),
        out_shape=jax.ShapeDtypeStruct((B, 1), jnp.float32),
        in_specs=[_VMEM_SPEC] * 3,
        out_specs=_VMEM_SPEC,
        cost_estimate=ce,
    )(x2d, w_rec, p_f32)


# ----------------------------------------------------------------------------
# Parameters: PyTorch-layout init + conversion to the packed kernel layout
# ----------------------------------------------------------------------------
def init_raw_params(key, seq_length, n_features, n_hidden, n_layers):
    """Mirror nn.LSTM / nn.Linear parameter shapes (PyTorch layout)."""
    raw = {"lstm": []}
    k_lstm = 1.0 / math.sqrt(n_hidden)
    in_size = n_features
    for _ in range(n_layers):
        key, k1, k2, k3, k4 = jax.random.split(key, 5)
        w_ih = jax.random.uniform(k1, (4 * n_hidden, in_size), jnp.float32, -k_lstm, k_lstm)
        w_hh = jax.random.uniform(k2, (4 * n_hidden, n_hidden), jnp.float32, -k_lstm, k_lstm)
        b_ih = jax.random.uniform(k3, (4 * n_hidden,), jnp.float32, -k_lstm, k_lstm)
        b_hh = jax.random.uniform(k4, (4 * n_hidden,), jnp.float32, -k_lstm, k_lstm)
        raw["lstm"].append((w_ih, w_hh, b_ih, b_hh))
        in_size = n_hidden

    fan_in = n_hidden * seq_length
    k_lin = 1.0 / math.sqrt(fan_in)
    key, k1, k2 = jax.random.split(key, 3)
    raw["w_lin"] = jax.random.uniform(k1, (1, fan_in), jnp.float32, -k_lin, k_lin)
    raw["b_lin"] = jax.random.uniform(k2, (1,), jnp.float32, -k_lin, k_lin)
    return raw


def prepare_params(raw, seq_length, n_hidden):
    """Convert PyTorch-layout params to the packed kernel layout (done once, offline)."""
    H = n_hidden
    T = seq_length
    G = 4 * H
    n_layers = len(raw["lstm"])

    # 2x scale on the g-gate columns so the kernel can use tanh(z) = 2*sigmoid(2z) - 1.
    gate_scale = jnp.concatenate([jnp.ones((2 * H,), jnp.float32),
                                  2.0 * jnp.ones((H,), jnp.float32),
                                  jnp.ones((H,), jnp.float32)])

    w_rec = jnp.zeros((n_layers, 2 * H, G), jnp.float32)
    b_rows = []
    for l, (w_ih, w_hh, b_ih, b_hh) in enumerate(raw["lstm"]):
        wih_t = w_ih.T * gate_scale          # (Fin, 4H), gate cols i|f|g|o
        whh_t = w_hh.T * gate_scale          # (H, 4H)
        fin = wih_t.shape[0]
        w_rec = w_rec.at[l, 0:fin, :].set(wih_t)         # layer 0 zero-padded to H rows
        w_rec = w_rec.at[l, H:2 * H, :].set(whh_t)
        b_rows.append(((b_ih + b_hh) * gate_scale).reshape(1, G))
    w_rec = w_rec.astype(jnp.bfloat16)

    # nn.Linear weight (1, T*H): row t of (T, H) is W[0, t*H:(t+1)*H]; pad lanes to 4H.
    w_head = raw["w_lin"].reshape(T, H)
    w_head = jnp.pad(w_head, ((0, 0), (0, G - H)))
    b_out_row = jnp.zeros((1, G), jnp.float32).at[0, 0].set(raw["b_lin"][0])

    p_f32 = jnp.concatenate(b_rows + [w_head, b_out_row], axis=0)  # (n_layers+T+1, 4H)
    return w_rec, p_f32


# ----------------------------------------------------------------------------
# Pure-JAX reference (mirrors the PyTorch module exactly, f32 throughout)
# ----------------------------------------------------------------------------
@jax.jit
def reference_forward(x, raw):
    B, T, _ = x.shape
    h_seq = x
    for (w_ih, w_hh, b_ih, b_hh) in raw["lstm"]:
        H = w_hh.shape[1]
        h = jnp.zeros((B, H), jnp.float32)
        c = jnp.zeros((B, H), jnp.float32)
        outs = []
        for t in range(T):
            gates = h_seq[:, t, :] @ w_ih.T + h @ w_hh.T + b_ih + b_hh
            i_g = jax.nn.sigmoid(gates[:, 0 * H:1 * H])
            f_g = jax.nn.sigmoid(gates[:, 1 * H:2 * H])
            g_g = jnp.tanh(gates[:, 2 * H:3 * H])
            o_g = jax.nn.sigmoid(gates[:, 3 * H:4 * H])
            c = f_g * c + i_g * g_g
            h = o_g * jnp.tanh(c)
            outs.append(h)
        h_seq = jnp.stack(outs, axis=1)      # (B, T, H)
    flat = h_seq.reshape(B, -1)              # (B, T*H)
    return flat @ raw["w_lin"].T + raw["b_lin"]


# ----------------------------------------------------------------------------
if __name__ == "__main__":
    seq_length, n_features, n_hidden, n_layers = 8, 4, 32, 2
    batch = 2

    key = jax.random.PRNGKey(0)
    key, kx = jax.random.split(key)
    x = jax.random.normal(kx, (batch, seq_length, n_features), jnp.float32)

    raw = init_raw_params(key, seq_length, n_features, n_hidden, n_layers)
    w_rec, p_f32 = prepare_params(raw, seq_length, n_hidden)

    out = mood_prediction_forward(x, w_rec, p_f32)
    jax.block_until_ready(out)
    assert out.shape == (batch, 1) and out.dtype == jnp.float32

    ref = reference_forward(x, raw)
    jax.block_until_ready(ref)

    # bf16 MXU inputs compounded over n_layers x T recurrent steps (state/accumulation in
    # f32): tolerance relaxed vs the all-f32 version, per the perf review.
    assert bool(jnp.allclose(out, ref, atol=2e-2, rtol=2e-2)), (out, ref)

    print("KERNEL_OK")
</pallas_src>

<mosaic_0001>
module attributes {stable_mosaic.version = 11 : i64} {
  func.func @kernel(%arg0: memref<16x32xbf16, #tpu.memory_space<vmem>>, %arg1: memref<2x64x128xbf16, #tpu.memory_space<vmem>>, %arg2: memref<11x128xf32, #tpu.memory_space<vmem>>, %arg3: memref<2x1xf32, #tpu.memory_space<vmem>>) attributes {dimension_semantics = [], scalar_prefetch = 0 : i64, scratch_operands = 0 : i64, tpu.core_type = #tpu.core_type<tc>} {
    %c0 = arith.constant 0 : index
    %c0_0 = arith.constant 0 : index
    %c0_1 = arith.constant 0 : index
    %0 = vector.load %arg1[%c0, %c0_0, %c0_1] : memref<2x64x128xbf16, #tpu.memory_space<vmem>>, vector<1x64x128xbf16>
    %1 = vector.shape_cast %0 : vector<1x64x128xbf16> to vector<64x128xbf16>
    %c1 = arith.constant 1 : index
    %c0_2 = arith.constant 0 : index
    %c0_3 = arith.constant 0 : index
    %2 = vector.load %arg1[%c1, %c0_2, %c0_3] : memref<2x64x128xbf16, #tpu.memory_space<vmem>>, vector<1x64x128xbf16>
    %3 = vector.shape_cast %2 : vector<1x64x128xbf16> to vector<64x128xbf16>
    %4 = vector.extract_strided_slice %1 {offsets = [0, 0], sizes = [32, 128], strides = [1, 1]} : vector<64x128xbf16> to vector<32x128xbf16>
    %5 = vector.extract_strided_slice %3 {offsets = [0, 0], sizes = [32, 128], strides = [1, 1]} : vector<64x128xbf16> to vector<32x128xbf16>
    %6 = vector.extract_strided_slice %1 {offsets = [32, 0], sizes = [32, 128], strides = [1, 1]} : vector<64x128xbf16> to vector<32x128xbf16>
    %7 = vector.extract_strided_slice %3 {offsets = [32, 0], sizes = [32, 128], strides = [1, 1]} : vector<64x128xbf16> to vector<32x128xbf16>
    %c0_4 = arith.constant 0 : index
    %c0_5 = arith.constant 0 : index
    %8 = vector.load %arg2[%c0_4, %c0_5] : memref<11x128xf32, #tpu.memory_space<vmem>>, vector<11x128xf32>
    %9 = vector.extract_strided_slice %8 {offsets = [0, 0], sizes = [1, 128], strides = [1, 1]} : vector<11x128xf32> to vector<1x128xf32>
    %10 = vector.extract_strided_slice %8 {offsets = [1, 0], sizes = [1, 128], strides = [1, 1]} : vector<11x128xf32> to vector<1x128xf32>
    %11 = vector.extract_strided_slice %8 {offsets = [2, 0], sizes = [8, 128], strides = [1, 1]} : vector<11x128xf32> to vector<8x128xf32>
    %12 = vector.extract_strided_slice %8 {offsets = [10, 0], sizes = [1, 1], strides = [1, 1]} : vector<11x128xf32> to vector<1x1xf32>
    %c0_6 = arith.constant 0 : index
    %c0_7 = arith.constant 0 : index
    %13 = vector.load %arg0[%c0_6, %c0_7] : memref<16x32xbf16, #tpu.memory_space<vmem>>, vector<16x32xbf16>
    %cst = arith.constant dense<0.000000e+00> : vector<16x128xf32>
    %14 = tpu.matmul %13, %4, %cst {dimension_numbers = #tpu.dot_dimension_numbers<[1], [0], [0], [1], [0, 0, 1, 1], [], []>} : vector<16x32xbf16>, vector<32x128xbf16>, vector<16x128xf32> -> vector<16x128xf32>
    %15 = vector.broadcast %9 : vector<1x128xf32> to vector<16x128xf32>
    %16 = arith.addf %14, %15 : vector<16x128xf32>
    %cst_8 = arith.constant 0.000000e+00 : f32
    %17 = vector.broadcast %cst_8 : f32 to vector<2x32xf32>
    %cst_9 = arith.constant 0.000000e+00 : bf16
    %18 = vector.broadcast %cst_9 : bf16 to vector<2x32xbf16>
    %cst_10 = arith.constant 0.000000e+00 : f32
    %19 = vector.broadcast %cst_10 : f32 to vector<2x32xf32>
    %20 = vector.extract_strided_slice %16 {offsets = [0, 0], sizes = [2, 128], strides = [1, 1]} : vector<16x128xf32> to vector<2x128xf32>
    %cst_11 = arith.constant dense<0.000000e+00> : vector<2x128xf32>
    %21 = tpu.matmul %18, %6, %cst_11 {dimension_numbers = #tpu.dot_dimension_numbers<[1], [0], [0], [1], [0, 0, 1, 1], [], []>} : vector<2x32xbf16>, vector<32x128xbf16>, vector<2x128xf32> -> vector<2x128xf32>
    %22 = arith.addf %20, %21 : vector<2x128xf32>
    %23 = arith.negf %22 : vector<2x128xf32>
    %24 = math.exp %23 : vector<2x128xf32>
    %cst_12 = arith.constant 1.000000e+00 : f32
    %25 = vector.broadcast %cst_12 : f32 to vector<2x128xf32>
    %26 = arith.addf %25, %24 : vector<2x128xf32>
    %27 = arith.divf %25, %26 : vector<2x128xf32>
    %28 = vector.extract_strided_slice %27 {offsets = [0, 0], sizes = [2, 32], strides = [1, 1]} : vector<2x128xf32> to vector<2x32xf32>
    %29 = vector.extract_strided_slice %27 {offsets = [0, 32], sizes = [2, 32], strides = [1, 1]} : vector<2x128xf32> to vector<2x32xf32>
    %30 = vector.extract_strided_slice %27 {offsets = [0, 64], sizes = [2, 32], strides = [1, 1]} : vector<2x128xf32> to vector<2x32xf32>
    %cst_13 = arith.constant 2.000000e+00 : f32
    %31 = vector.broadcast %cst_13 : f32 to vector<2x32xf32>
    %32 = arith.mulf %31, %30 : vector<2x32xf32>
    %cst_14 = arith.constant 1.000000e+00 : f32
    %33 = vector.broadcast %cst_14 : f32 to vector<2x32xf32>
    %34 = arith.subf %32, %33 : vector<2x32xf32>
    %35 = vector.extract_strided_slice %27 {offsets = [0, 96], sizes = [2, 32], strides = [1, 1]} : vector<2x128xf32> to vector<2x32xf32>
    %36 = arith.mulf %29, %17 : vector<2x32xf32>
    %37 = arith.mulf %28, %34 : vector<2x32xf32>
    %38 = arith.addf %36, %37 : vector<2x32xf32>
    %39 = math.tanh %38 : vector<2x32xf32>
    %40 = arith.mulf %35, %39 : vector<2x32xf32>
    %41 = arith.truncf %40 : vector<2x32xf32> to vector<2x32xbf16>
    %cst_15 = arith.constant dense<0.000000e+00> : vector<2x128xf32>
    %42 = tpu.matmul %41, %5, %cst_15 {dimension_numbers = #tpu.dot_dimension_numbers<[1], [0], [0], [1], [0, 0, 1, 1], [], []>} : vector<2x32xbf16>, vector<32x128xbf16>, vector<2x128xf32> -> vector<2x128xf32>
    %cst_16 = arith.constant dense<0.000000e+00> : vector<2x128xf32>
    %43 = tpu.matmul %18, %7, %cst_16 {dimension_numbers = #tpu.dot_dimension_numbers<[1], [0], [0], [1], [0, 0, 1, 1], [], []>} : vector<2x32xbf16>, vector<32x128xbf16>, vector<2x128xf32> -> vector<2x128xf32>
    %44 = arith.addf %42, %43 : vector<2x128xf32>
    %45 = vector.broadcast %10 : vector<1x128xf32> to vector<2x128xf32>
    %46 = arith.addf %44, %45 : vector<2x128xf32>
    %47 = arith.negf %46 : vector<2x128xf32>
    %48 = math.exp %47 : vector<2x128xf32>
    %cst_17 = arith.constant 1.000000e+00 : f32
    %49 = vector.broadcast %cst_17 : f32 to vector<2x128xf32>
    %50 = arith.addf %49, %48 : vector<2x128xf32>
    %51 = arith.divf %49, %50 : vector<2x128xf32>
    %52 = vector.extract_strided_slice %51 {offsets = [0, 0], sizes = [2, 32], strides = [1, 1]} : vector<2x128xf32> to vector<2x32xf32>
    %53 = vector.extract_strided_slice %51 {offsets = [0, 32], sizes = [2, 32], strides = [1, 1]} : vector<2x128xf32> to vector<2x32xf32>
    %54 = vector.extract_strided_slice %51 {offsets = [0, 64], sizes = [2, 32], strides = [1, 1]} : vector<2x128xf32> to vector<2x32xf32>
    %cst_18 = arith.constant 2.000000e+00 : f32
    %55 = vector.broadcast %cst_18 : f32 to vector<2x32xf32>
    %56 = arith.mulf %55, %54 : vector<2x32xf32>
    %cst_19 = arith.constant 1.000000e+00 : f32
    %57 = vector.broadcast %cst_19 : f32 to vector<2x32xf32>
    %58 = arith.subf %56, %57 : vector<2x32xf32>
    %59 = vector.extract_strided_slice %51 {offsets = [0, 96], sizes = [2, 32], strides = [1, 1]} : vector<2x128xf32> to vector<2x32xf32>
    %60 = arith.mulf %53, %17 : vector<2x32xf32>
    %61 = arith.mulf %52, %58 : vector<2x32xf32>
    %62 = arith.addf %60, %61 : vector<2x32xf32>
    %63 = math.tanh %62 : vector<2x32xf32>
    %64 = arith.mulf %59, %63 : vector<2x32xf32>
    %65 = arith.truncf %64 : vector<2x32xf32> to vector<2x32xbf16>
    %66 = vector.extract_strided_slice %11 {offsets = [0, 0], sizes = [1, 32], strides = [1, 1]} : vector<8x128xf32> to vector<1x32xf32>
    %67 = vector.broadcast %66 : vector<1x32xf32> to vector<2x32xf32>
    %68 = arith.mulf %64, %67 : vector<2x32xf32>
    %69 = arith.addf %19, %68 : vector<2x32xf32>
    %70 = vector.extract_strided_slice %16 {offsets = [2, 0], sizes = [2, 128], strides = [1, 1]} : vector<16x128xf32> to vector<2x128xf32>
    %cst_20 = arith.constant dense<0.000000e+00> : vector<2x128xf32>
    %71 = tpu.matmul %41, %6, %cst_20 {dimension_numbers = #tpu.dot_dimension_numbers<[1], [0], [0], [1], [0, 0, 1, 1], [], []>} : vector<2x32xbf16>, vector<32x128xbf16>, vector<2x128xf32> -> vector<2x128xf32>
    %72 = arith.addf %70, %71 : vector<2x128xf32>
    %73 = arith.negf %72 : vector<2x128xf32>
    %74 = math.exp %73 : vector<2x128xf32>
    %cst_21 = arith.constant 1.000000e+00 : f32
    %75 = vector.broadcast %cst_21 : f32 to vector<2x128xf32>
    %76 = arith.addf %75, %74 : vector<2x128xf32>
    %77 = arith.divf %75, %76 : vector<2x128xf32>
    %78 = vector.extract_strided_slice %77 {offsets = [0, 0], sizes = [2, 32], strides = [1, 1]} : vector<2x128xf32> to vector<2x32xf32>
    %79 = vector.extract_strided_slice %77 {offsets = [0, 32], sizes = [2, 32], strides = [1, 1]} : vector<2x128xf32> to vector<2x32xf32>
    %80 = vector.extract_strided_slice %77 {offsets = [0, 64], sizes = [2, 32], strides = [1, 1]} : vector<2x128xf32> to vector<2x32xf32>
    %cst_22 = arith.constant 2.000000e+00 : f32
    %81 = vector.broadcast %cst_22 : f32 to vector<2x32xf32>
    %82 = arith.mulf %81, %80 : vector<2x32xf32>
    %cst_23 = arith.constant 1.000000e+00 : f32
    %83 = vector.broadcast %cst_23 : f32 to vector<2x32xf32>
    %84 = arith.subf %82, %83 : vector<2x32xf32>
    %85 = vector.extract_strided_slice %77 {offsets = [0, 96], sizes = [2, 32], strides = [1, 1]} : vector<2x128xf32> to vector<2x32xf32>
    %86 = arith.mulf %79, %38 : vector<2x32xf32>
    %87 = arith.mulf %78, %84 : vector<2x32xf32>
    %88 = arith.addf %86, %87 : vector<2x32xf32>
    %89 = math.tanh %88 : vector<2x32xf32>
    %90 = arith.mulf %85, %89 : vector<2x32xf32>
    %91 = arith.truncf %90 : vector<2x32xf32> to vector<2x32xbf16>
    %cst_24 = arith.constant dense<0.000000e+00> : vector<2x128xf32>
    %92 = tpu.matmul %91, %5, %cst_24 {dimension_numbers = #tpu.dot_dimension_numbers<[1], [0], [0], [1], [0, 0, 1, 1], [], []>} : vector<2x32xbf16>, vector<32x128xbf16>, vector<2x128xf32> -> vector<2x128xf32>
    %cst_25 = arith.constant dense<0.000000e+00> : vector<2x128xf32>
    %93 = tpu.matmul %65, %7, %cst_25 {dimension_numbers = #tpu.dot_dimension_numbers<[1], [0], [0], [1], [0, 0, 1, 1], [], []>} : vector<2x32xbf16>, vector<32x128xbf16>, vector<2x128xf32> -> vector<2x128xf32>
    %94 = arith.addf %92, %93 : vector<2x128xf32>
    %95 = vector.broadcast %10 : vector<1x128xf32> to vector<2x128xf32>
    %96 = arith.addf %94, %95 : vector<2x128xf32>
    %97 = arith.negf %96 : vector<2x128xf32>
    %98 = math.exp %97 : vector<2x128xf32>
    %cst_26 = arith.constant 1.000000e+00 : f32
    %99 = vector.broadcast %cst_26 : f32 to vector<2x128xf32>
    %100 = arith.addf %99, %98 : vector<2x128xf32>
    %101 = arith.divf %99, %100 : vector<2x128xf32>
    %102 = vector.extract_strided_slice %101 {offsets = [0, 0], sizes = [2, 32], strides = [1, 1]} : vector<2x128xf32> to vector<2x32xf32>
    %103 = vector.extract_strided_slice %101 {offsets = [0, 32], sizes = [2, 32], strides = [1, 1]} : vector<2x128xf32> to vector<2x32xf32>
    %104 = vector.extract_strided_slice %101 {offsets = [0, 64], sizes = [2, 32], strides = [1, 1]} : vector<2x128xf32> to vector<2x32xf32>
    %cst_27 = arith.constant 2.000000e+00 : f32
    %105 = vector.broadcast %cst_27 : f32 to vector<2x32xf32>
    %106 = arith.mulf %105, %104 : vector<2x32xf32>
    %cst_28 = arith.constant 1.000000e+00 : f32
    %107 = vector.broadcast %cst_28 : f32 to vector<2x32xf32>
    %108 = arith.subf %106, %107 : vector<2x32xf32>
    %109 = vector.extract_strided_slice %101 {offsets = [0, 96], sizes = [2, 32], strides = [1, 1]} : vector<2x128xf32> to vector<2x32xf32>
    %110 = arith.mulf %103, %62 : vector<2x32xf32>
    %111 = arith.mulf %102, %108 : vector<2x32xf32>
    %112 = arith.addf %110, %111 : vector<2x32xf32>
    %113 = math.tanh %112 : vector<2x32xf32>
    %114 = arith.mulf %109, %113 : vector<2x32xf32>
    %115 = arith.truncf %114 : vector<2x32xf32> to vector<2x32xbf16>
    %116 = vector.extract_strided_slice %11 {offsets = [1, 0], sizes = [1, 32], strides = [1, 1]} : vector<8x128xf32> to vector<1x32xf32>
    %117 = vector.broadcast %116 : vector<1x32xf32> to vector<2x32xf32>
    %118 = arith.mulf %114, %117 : vector<2x32xf32>
    %119 = arith.addf %69, %118 : vector<2x32xf32>
    %120 = vector.extract_strided_slice %16 {offsets = [4, 0], sizes = [2, 128], strides = [1, 1]} : vector<16x128xf32> to vector<2x128xf32>
    %cst_29 = arith.constant dense<0.000000e+00> : vector<2x128xf32>
    %121 = tpu.matmul %91, %6, %cst_29 {dimension_numbers = #tpu.dot_dimension_numbers<[1], [0], [0], [1], [0, 0, 1, 1], [], []>} : vector<2x32xbf16>, vector<32x128xbf16>, vector<2x128xf32> -> vector<2x128xf32>
    %122 = arith.addf %120, %121 : vector<2x128xf32>
    %123 = arith.negf %122 : vector<2x128xf32>
    %124 = math.exp %123 : vector<2x128xf32>
    %cst_30 = arith.constant 1.000000e+00 : f32
    %125 = vector.broadcast %cst_30 : f32 to vector<2x128xf32>
    %126 = arith.addf %125, %124 : vector<2x128xf32>
    %127 = arith.divf %125, %126 : vector<2x128xf32>
    %128 = vector.extract_strided_slice %127 {offsets = [0, 0], sizes = [2, 32], strides = [1, 1]} : vector<2x128xf32> to vector<2x32xf32>
    %129 = vector.extract_strided_slice %127 {offsets = [0, 32], sizes = [2, 32], strides = [1, 1]} : vector<2x128xf32> to vector<2x32xf32>
    %130 = vector.extract_strided_slice %127 {offsets = [0, 64], sizes = [2, 32], strides = [1, 1]} : vector<2x128xf32> to vector<2x32xf32>
    %cst_31 = arith.constant 2.000000e+00 : f32
    %131 = vector.broadcast %cst_31 : f32 to vector<2x32xf32>
    %132 = arith.mulf %131, %130 : vector<2x32xf32>
    %cst_32 = arith.constant 1.000000e+00 : f32
    %133 = vector.broadcast %cst_32 : f32 to vector<2x32xf32>
    %134 = arith.subf %132, %133 : vector<2x32xf32>
    %135 = vector.extract_strided_slice %127 {offsets = [0, 96], sizes = [2, 32], strides = [1, 1]} : vector<2x128xf32> to vector<2x32xf32>
    %136 = arith.mulf %129, %88 : vector<2x32xf32>
    %137 = arith.mulf %128, %134 : vector<2x32xf32>
    %138 = arith.addf %136, %137 : vector<2x32xf32>
    %139 = math.tanh %138 : vector<2x32xf32>
    %140 = arith.mulf %135, %139 : vector<2x32xf32>
    %141 = arith.truncf %140 : vector<2x32xf32> to vector<2x32xbf16>
    %cst_33 = arith.constant dense<0.000000e+00> : vector<2x128xf32>
    %142 = tpu.matmul %141, %5, %cst_33 {dimension_numbers = #tpu.dot_dimension_numbers<[1], [0], [0], [1], [0, 0, 1, 1], [], []>} : vector<2x32xbf16>, vector<32x128xbf16>, vector<2x128xf32> -> vector<2x128xf32>
    %cst_34 = arith.constant dense<0.000000e+00> : vector<2x128xf32>
    %143 = tpu.matmul %115, %7, %cst_34 {dimension_numbers = #tpu.dot_dimension_numbers<[1], [0], [0], [1], [0, 0, 1, 1], [], []>} : vector<2x32xbf16>, vector<32x128xbf16>, vector<2x128xf32> -> vector<2x128xf32>
    %144 = arith.addf %142, %143 : vector<2x128xf32>
    %145 = vector.broadcast %10 : vector<1x128xf32> to vector<2x128xf32>
    %146 = arith.addf %144, %145 : vector<2x128xf32>
    %147 = arith.negf %146 : vector<2x128xf32>
    %148 = math.exp %147 : vector<2x128xf32>
    %cst_35 = arith.constant 1.000000e+00 : f32
    %149 = vector.broadcast %cst_35 : f32 to vector<2x128xf32>
    %150 = arith.addf %149, %148 : vector<2x128xf32>
    %151 = arith.divf %149, %150 : vector<2x128xf32>
    %152 = vector.extract_strided_slice %151 {offsets = [0, 0], sizes = [2, 32], strides = [1, 1]} : vector<2x128xf32> to vector<2x32xf32>
    %153 = vector.extract_strided_slice %151 {offsets = [0, 32], sizes = [2, 32], strides = [1, 1]} : vector<2x128xf32> to vector<2x32xf32>
    %154 = vector.extract_strided_slice %151 {offsets = [0, 64], sizes = [2, 32], strides = [1, 1]} : vector<2x128xf32> to vector<2x32xf32>
    %cst_36 = arith.constant 2.000000e+00 : f32
    %155 = vector.broadcast %cst_36 : f32 to vector<2x32xf32>
    %156 = arith.mulf %155, %154 : vector<2x32xf32>
    %cst_37 = arith.constant 1.000000e+00 : f32
    %157 = vector.broadcast %cst_37 : f32 to vector<2x32xf32>
    %158 = arith.subf %156, %157 : vector<2x32xf32>
    %159 = vector.extract_strided_slice %151 {offsets = [0, 96], sizes = [2, 32], strides = [1, 1]} : vector<2x128xf32> to vector<2x32xf32>
    %160 = arith.mulf %153, %112 : vector<2x32xf32>
    %161 = arith.mulf %152, %158 : vector<2x32xf32>
    %162 = arith.addf %160, %161 : vector<2x32xf32>
    %163 = math.tanh %162 : vector<2x32xf32>
    %164 = arith.mulf %159, %163 : vector<2x32xf32>
    %165 = arith.truncf %164 : vector<2x32xf32> to vector<2x32xbf16>
    %166 = vector.extract_strided_slice %11 {offsets = [2, 0], sizes = [1, 32], strides = [1, 1]} : vector<8x128xf32> to vector<1x32xf32>
    %167 = vector.broadcast %166 : vector<1x32xf32> to vector<2x32xf32>
    %168 = arith.mulf %164, %167 : vector<2x32xf32>
    %169 = arith.addf %119, %168 : vector<2x32xf32>
    %170 = vector.extract_strided_slice %16 {offsets = [6, 0], sizes = [2, 128], strides = [1, 1]} : vector<16x128xf32> to vector<2x128xf32>
    %cst_38 = arith.constant dense<0.000000e+00> : vector<2x128xf32>
    %171 = tpu.matmul %141, %6, %cst_38 {dimension_numbers = #tpu.dot_dimension_numbers<[1], [0], [0], [1], [0, 0, 1, 1], [], []>} : vector<2x32xbf16>, vector<32x128xbf16>, vector<2x128xf32> -> vector<2x128xf32>
    %172 = arith.addf %170, %171 : vector<2x128xf32>
    %173 = arith.negf %172 : vector<2x128xf32>
    %174 = math.exp %173 : vector<2x128xf32>
    %cst_39 = arith.constant 1.000000e+00 : f32
    %175 = vector.broadcast %cst_39 : f32 to vector<2x128xf32>
    %176 = arith.addf %175, %174 : vector<2x128xf32>
    %177 = arith.divf %175, %176 : vector<2x128xf32>
    %178 = vector.extract_strided_slice %177 {offsets = [0, 0], sizes = [2, 32], strides = [1, 1]} : vector<2x128xf32> to vector<2x32xf32>
    %179 = vector.extract_strided_slice %177 {offsets = [0, 32], sizes = [2, 32], strides = [1, 1]} : vector<2x128xf32> to vector<2x32xf32>
    %180 = vector.extract_strided_slice %177 {offsets = [0, 64], sizes = [2, 32], strides = [1, 1]} : vector<2x128xf32> to vector<2x32xf32>
    %cst_40 = arith.constant 2.000000e+00 : f32
    %181 = vector.broadcast %cst_40 : f32 to vector<2x32xf32>
    %182 = arith.mulf %181, %180 : vector<2x32xf32>
    %cst_41 = arith.constant 1.000000e+00 : f32
    %183 = vector.broadcast %cst_41 : f32 to vector<2x32xf32>
    %184 = arith.subf %182, %183 : vector<2x32xf32>
    %185 = vector.extract_strided_slice %177 {offsets = [0, 96], sizes = [2, 32], strides = [1, 1]} : vector<2x128xf32> to vector<2x32xf32>
    %186 = arith.mulf %179, %138 : vector<2x32xf32>
    %187 = arith.mulf %178, %184 : vector<2x32xf32>
    %188 = arith.addf %186, %187 : vector<2x32xf32>
    %189 = math.tanh %188 : vector<2x32xf32>
    %190 = arith.mulf %185, %189 : vector<2x32xf32>
    %191 = arith.truncf %190 : vector<2x32xf32> to vector<2x32xbf16>
    %cst_42 = arith.constant dense<0.000000e+00> : vector<2x128xf32>
    %192 = tpu.matmul %191, %5, %cst_42 {dimension_numbers = #tpu.dot_dimension_numbers<[1], [0], [0], [1], [0, 0, 1, 1], [], []>} : vector<2x32xbf16>, vector<32x128xbf16>, vector<2x128xf32> -> vector<2x128xf32>
    %cst_43 = arith.constant dense<0.000000e+00> : vector<2x128xf32>
    %193 = tpu.matmul %165, %7, %cst_43 {dimension_numbers = #tpu.dot_dimension_numbers<[1], [0], [0], [1], [0, 0, 1, 1], [], []>} : vector<2x32xbf16>, vector<32x128xbf16>, vector<2x128xf32> -> vector<2x128xf32>
    %194 = arith.addf %192, %193 : vector<2x128xf32>
    %195 = vector.broadcast %10 : vector<1x128xf32> to vector<2x128xf32>
    %196 = arith.addf %194, %195 : vector<2x128xf32>
    %197 = arith.negf %196 : vector<2x128xf32>
    %198 = math.exp %197 : vector<2x128xf32>
    %cst_44 = arith.constant 1.000000e+00 : f32
    %199 = vector.broadcast %cst_44 : f32 to vector<2x128xf32>
    %200 = arith.addf %199, %198 : vector<2x128xf32>
    %201 = arith.divf %199, %200 : vector<2x128xf32>
    %202 = vector.extract_strided_slice %201 {offsets = [0, 0], sizes = [2, 32], strides = [1, 1]} : vector<2x128xf32> to vector<2x32xf32>
    %203 = vector.extract_strided_slice %201 {offsets = [0, 32], sizes = [2, 32], strides = [1, 1]} : vector<2x128xf32> to vector<2x32xf32>
    %204 = vector.extract_strided_slice %201 {offsets = [0, 64], sizes = [2, 32], strides = [1, 1]} : vector<2x128xf32> to vector<2x32xf32>
    %cst_45 = arith.constant 2.000000e+00 : f32
    %205 = vector.broadcast %cst_45 : f32 to vector<2x32xf32>
    %206 = arith.mulf %205, %204 : vector<2x32xf32>
    %cst_46 = arith.constant 1.000000e+00 : f32
    %207 = vector.broadcast %cst_46 : f32 to vector<2x32xf32>
    %208 = arith.subf %206, %207 : vector<2x32xf32>
    %209 = vector.extract_strided_slice %201 {offsets = [0, 96], sizes = [2, 32], strides = [1, 1]} : vector<2x128xf32> to vector<2x32xf32>
    %210 = arith.mulf %203, %162 : vector<2x32xf32>
    %211 = arith.mulf %202, %208 : vector<2x32xf32>
    %212 = arith.addf %210, %211 : vector<2x32xf32>
    %213 = math.tanh %212 : vector<2x32xf32>
    %214 = arith.mulf %209, %213 : vector<2x32xf32>
    %215 = arith.truncf %214 : vector<2x32xf32> to vector<2x32xbf16>
    %216 = vector.extract_strided_slice %11 {offsets = [3, 0], sizes = [1, 32], strides = [1, 1]} : vector<8x128xf32> to vector<1x32xf32>
    %217 = vector.broadcast %216 : vector<1x32xf32> to vector<2x32xf32>
    %218 = arith.mulf %214, %217 : vector<2x32xf32>
    %219 = arith.addf %169, %218 : vector<2x32xf32>
    %220 = vector.extract_strided_slice %16 {offsets = [8, 0], sizes = [2, 128], strides = [1, 1]} : vector<16x128xf32> to vector<2x128xf32>
    %cst_47 = arith.constant dense<0.000000e+00> : vector<2x128xf32>
    %221 = tpu.matmul %191, %6, %cst_47 {dimension_numbers = #tpu.dot_dimension_numbers<[1], [0], [0], [1], [0, 0, 1, 1], [], []>} : vector<2x32xbf16>, vector<32x128xbf16>, vector<2x128xf32> -> vector<2x128xf32>
    %222 = arith.addf %220, %221 : vector<2x128xf32>
    %223 = arith.negf %222 : vector<2x128xf32>
    %224 = math.exp %223 : vector<2x128xf32>
    %cst_48 = arith.constant 1.000000e+00 : f32
    %225 = vector.broadcast %cst_48 : f32 to vector<2x128xf32>
    %226 = arith.addf %225, %224 : vector<2x128xf32>
    %227 = arith.divf %225, %226 : vector<2x128xf32>
    %228 = vector.extract_strided_slice %227 {offsets = [0, 0], sizes = [2, 32], strides = [1, 1]} : vector<2x128xf32> to vector<2x32xf32>
    %229 = vector.extract_strided_slice %227 {offsets = [0, 32], sizes = [2, 32], strides = [1, 1]} : vector<2x128xf32> to vector<2x32xf32>
    %230 = vector.extract_strided_slice %227 {offsets = [0, 64], sizes = [2, 32], strides = [1, 1]} : vector<2x128xf32> to vector<2x32xf32>
    %cst_49 = arith.constant 2.000000e+00 : f32
    %231 = vector.broadcast %cst_49 : f32 to vector<2x32xf32>
    %232 = arith.mulf %231, %230 : vector<2x32xf32>
    %cst_50 = arith.constant 1.000000e+00 : f32
    %233 = vector.broadcast %cst_50 : f32 to vector<2x32xf32>
    %234 = arith.subf %232, %233 : vector<2x32xf32>
    %235 = vector.extract_strided_slice %227 {offsets = [0, 96], sizes = [2, 32], strides = [1, 1]} : vector<2x128xf32> to vector<2x32xf32>
    %236 = arith.mulf %229, %188 : vector<2x32xf32>
    %237 = arith.mulf %228, %234 : vector<2x32xf32>
    %238 = arith.addf %236, %237 : vector<2x32xf32>
    %239 = math.tanh %238 : vector<2x32xf32>
    %240 = arith.mulf %235, %239 : vector<2x32xf32>
    %241 = arith.truncf %240 : vector<2x32xf32> to vector<2x32xbf16>
    %cst_51 = arith.constant dense<0.000000e+00> : vector<2x128xf32>
    %242 = tpu.matmul %241, %5, %cst_51 {dimension_numbers = #tpu.dot_dimension_numbers<[1], [0], [0], [1], [0, 0, 1, 1], [], []>} : vector<2x32xbf16>, vector<32x128xbf16>, vector<2x128xf32> -> vector<2x128xf32>
    %cst_52 = arith.constant dense<0.000000e+00> : vector<2x128xf32>
    %243 = tpu.matmul %215, %7, %cst_52 {dimension_numbers = #tpu.dot_dimension_numbers<[1], [0], [0], [1], [0, 0, 1, 1], [], []>} : vector<2x32xbf16>, vector<32x128xbf16>, vector<2x128xf32> -> vector<2x128xf32>
    %244 = arith.addf %242, %243 : vector<2x128xf32>
    %245 = vector.broadcast %10 : vector<1x128xf32> to vector<2x128xf32>
    %246 = arith.addf %244, %245 : vector<2x128xf32>
    %247 = arith.negf %246 : vector<2x128xf32>
    %248 = math.exp %247 : vector<2x128xf32>
    %cst_53 = arith.constant 1.000000e+00 : f32
    %249 = vector.broadcast %cst_53 : f32 to vector<2x128xf32>
    %250 = arith.addf %249, %248 : vector<2x128xf32>
    %251 = arith.divf %249, %250 : vector<2x128xf32>
    %252 = vector.extract_strided_slice %251 {offsets = [0, 0], sizes = [2, 32], strides = [1, 1]} : vector<2x128xf32> to vector<2x32xf32>
    %253 = vector.extract_strided_slice %251 {offsets = [0, 32], sizes = [2, 32], strides = [1, 1]} : vector<2x128xf32> to vector<2x32xf32>
    %254 = vector.extract_strided_slice %251 {offsets = [0, 64], sizes = [2, 32], strides = [1, 1]} : vector<2x128xf32> to vector<2x32xf32>
    %cst_54 = arith.constant 2.000000e+00 : f32
    %255 = vector.broadcast %cst_54 : f32 to vector<2x32xf32>
    %256 = arith.mulf %255, %254 : vector<2x32xf32>
    %cst_55 = arith.constant 1.000000e+00 : f32
    %257 = vector.broadcast %cst_55 : f32 to vector<2x32xf32>
    %258 = arith.subf %256, %257 : vector<2x32xf32>
    %259 = vector.extract_strided_slice %251 {offsets = [0, 96], sizes = [2, 32], strides = [1, 1]} : vector<2x128xf32> to vector<2x32xf32>
    %260 = arith.mulf %253, %212 : vector<2x32xf32>
    %261 = arith.mulf %252, %258 : vector<2x32xf32>
    %262 = arith.addf %260, %261 : vector<2x32xf32>
    %263 = math.tanh %262 : vector<2x32xf32>
    %264 = arith.mulf %259, %263 : vector<2x32xf32>
    %265 = arith.truncf %264 : vector<2x32xf32> to vector<2x32xbf16>
    %266 = vector.extract_strided_slice %11 {offsets = [4, 0], sizes = [1, 32], strides = [1, 1]} : vector<8x128xf32> to vector<1x32xf32>
    %267 = vector.broadcast %266 : vector<1x32xf32> to vector<2x32xf32>
    %268 = arith.mulf %264, %267 : vector<2x32xf32>
    %269 = arith.addf %219, %268 : vector<2x32xf32>
    %270 = vector.extract_strided_slice %16 {offsets = [10, 0], sizes = [2, 128], strides = [1, 1]} : vector<16x128xf32> to vector<2x128xf32>
    %cst_56 = arith.constant dense<0.000000e+00> : vector<2x128xf32>
    %271 = tpu.matmul %241, %6, %cst_56 {dimension_numbers = #tpu.dot_dimension_numbers<[1], [0], [0], [1], [0, 0, 1, 1], [], []>} : vector<2x32xbf16>, vector<32x128xbf16>, vector<2x128xf32> -> vector<2x128xf32>
    %272 = arith.addf %270, %271 : vector<2x128xf32>
    %273 = arith.negf %272 : vector<2x128xf32>
    %274 = math.exp %273 : vector<2x128xf32>
    %cst_57 = arith.constant 1.000000e+00 : f32
    %275 = vector.broadcast %cst_57 : f32 to vector<2x128xf32>
    %276 = arith.addf %275, %274 : vector<2x128xf32>
    %277 = arith.divf %275, %276 : vector<2x128xf32>
    %278 = vector.extract_strided_slice %277 {offsets = [0, 0], sizes = [2, 32], strides = [1, 1]} : vector<2x128xf32> to vector<2x32xf32>
    %279 = vector.extract_strided_slice %277 {offsets = [0, 32], sizes = [2, 32], strides = [1, 1]} : vector<2x128xf32> to vector<2x32xf32>
    %280 = vector.extract_strided_slice %277 {offsets = [0, 64], sizes = [2, 32], strides = [1, 1]} : vector<2x128xf32> to vector<2x32xf32>
    %cst_58 = arith.constant 2.000000e+00 : f32
    %281 = vector.broadcast %cst_58 : f32 to vector<2x32xf32>
    %282 = arith.mulf %281, %280 : vector<2x32xf32>
    %cst_59 = arith.constant 1.000000e+00 : f32
    %283 = vector.broadcast %cst_59 : f32 to vector<2x32xf32>
    %284 = arith.subf %282, %283 : vector<2x32xf32>
    %285 = vector.extract_strided_slice %277 {offsets = [0, 96], sizes = [2, 32], strides = [1, 1]} : vector<2x128xf32> to vector<2x32xf32>
    %286 = arith.mulf %279, %238 : vector<2x32xf32>
    %287 = arith.mulf %278, %284 : vector<2x32xf32>
    %288 = arith.addf %286, %287 : vector<2x32xf32>
    %289 = math.tanh %288 : vector<2x32xf32>
    %290 = arith.mulf %285, %289 : vector<2x32xf32>
    %291 = arith.truncf %290 : vector<2x32xf32> to vector<2x32xbf16>
    %cst_60 = arith.constant dense<0.000000e+00> : vector<2x128xf32>
    %292 = tpu.matmul %291, %5, %cst_60 {dimension_numbers = #tpu.dot_dimension_numbers<[1], [0], [0], [1], [0, 0, 1, 1], [], []>} : vector<2x32xbf16>, vector<32x128xbf16>, vector<2x128xf32> -> vector<2x128xf32>
    %cst_61 = arith.constant dense<0.000000e+00> : vector<2x128xf32>
    %293 = tpu.matmul %265, %7, %cst_61 {dimension_numbers = #tpu.dot_dimension_numbers<[1], [0], [0], [1], [0, 0, 1, 1], [], []>} : vector<2x32xbf16>, vector<32x128xbf16>, vector<2x128xf32> -> vector<2x128xf32>
    %294 = arith.addf %292, %293 : vector<2x128xf32>
    %295 = vector.broadcast %10 : vector<1x128xf32> to vector<2x128xf32>
    %296 = arith.addf %294, %295 : vector<2x128xf32>
    %297 = arith.negf %296 : vector<2x128xf32>
    %298 = math.exp %297 : vector<2x128xf32>
    %cst_62 = arith.constant 1.000000e+00 : f32
    %299 = vector.broadcast %cst_62 : f32 to vector<2x128xf32>
    %300 = arith.addf %299, %298 : vector<2x128xf32>
    %301 = arith.divf %299, %300 : vector<2x128xf32>
    %302 = vector.extract_strided_slice %301 {offsets = [0, 0], sizes = [2, 32], strides = [1, 1]} : vector<2x128xf32> to vector<2x32xf32>
    %303 = vector.extract_strided_slice %301 {offsets = [0, 32], sizes = [2, 32], strides = [1, 1]} : vector<2x128xf32> to vector<2x32xf32>
    %304 = vector.extract_strided_slice %301 {offsets = [0, 64], sizes = [2, 32], strides = [1, 1]} : vector<2x128xf32> to vector<2x32xf32>
    %cst_63 = arith.constant 2.000000e+00 : f32
    %305 = vector.broadcast %cst_63 : f32 to vector<2x32xf32>
    %306 = arith.mulf %305, %304 : vector<2x32xf32>
    %cst_64 = arith.constant 1.000000e+00 : f32
    %307 = vector.broadcast %cst_64 : f32 to vector<2x32xf32>
    %308 = arith.subf %306, %307 : vector<2x32xf32>
    %309 = vector.extract_strided_slice %301 {offsets = [0, 96], sizes = [2, 32], strides = [1, 1]} : vector<2x128xf32> to vector<2x32xf32>
    %310 = arith.mulf %303, %262 : vector<2x32xf32>
    %311 = arith.mulf %302, %308 : vector<2x32xf32>
    %312 = arith.addf %310, %311 : vector<2x32xf32>
    %313 = math.tanh %312 : vector<2x32xf32>
    %314 = arith.mulf %309, %313 : vector<2x32xf32>
    %315 = arith.truncf %314 : vector<2x32xf32> to vector<2x32xbf16>
    %316 = vector.extract_strided_slice %11 {offsets = [5, 0], sizes = [1, 32], strides = [1, 1]} : vector<8x128xf32> to vector<1x32xf32>
    %317 = vector.broadcast %316 : vector<1x32xf32> to vector<2x32xf32>
    %318 = arith.mulf %314, %317 : vector<2x32xf32>
    %319 = arith.addf %269, %318 : vector<2x32xf32>
    %320 = vector.extract_strided_slice %16 {offsets = [12, 0], sizes = [2, 128], strides = [1, 1]} : vector<16x128xf32> to vector<2x128xf32>
    %cst_65 = arith.constant dense<0.000000e+00> : vector<2x128xf32>
    %321 = tpu.matmul %291, %6, %cst_65 {dimension_numbers = #tpu.dot_dimension_numbers<[1], [0], [0], [1], [0, 0, 1, 1], [], []>} : vector<2x32xbf16>, vector<32x128xbf16>, vector<2x128xf32> -> vector<2x128xf32>
    %322 = arith.addf %320, %321 : vector<2x128xf32>
    %323 = arith.negf %322 : vector<2x128xf32>
    %324 = math.exp %323 : vector<2x128xf32>
    %cst_66 = arith.constant 1.000000e+00 : f32
    %325 = vector.broadcast %cst_66 : f32 to vector<2x128xf32>
    %326 = arith.addf %325, %324 : vector<2x128xf32>
    %327 = arith.divf %325, %326 : vector<2x128xf32>
    %328 = vector.extract_strided_slice %327 {offsets = [0, 0], sizes = [2, 32], strides = [1, 1]} : vector<2x128xf32> to vector<2x32xf32>
    %329 = vector.extract_strided_slice %327 {offsets = [0, 32], sizes = [2, 32], strides = [1, 1]} : vector<2x128xf32> to vector<2x32xf32>
    %330 = vector.extract_strided_slice %327 {offsets = [0, 64], sizes = [2, 32], strides = [1, 1]} : vector<2x128xf32> to vector<2x32xf32>
    %cst_67 = arith.constant 2.000000e+00 : f32
    %331 = vector.broadcast %cst_67 : f32 to vector<2x32xf32>
    %332 = arith.mulf %331, %330 : vector<2x32xf32>
    %cst_68 = arith.constant 1.000000e+00 : f32
    %333 = vector.broadcast %cst_68 : f32 to vector<2x32xf32>
    %334 = arith.subf %332, %333 : vector<2x32xf32>
    %335 = vector.extract_strided_slice %327 {offsets = [0, 96], sizes = [2, 32], strides = [1, 1]} : vector<2x128xf32> to vector<2x32xf32>
    %336 = arith.mulf %329, %288 : vector<2x32xf32>
    %337 = arith.mulf %328, %334 : vector<2x32xf32>
    %338 = arith.addf %336, %337 : vector<2x32xf32>
    %339 = math.tanh %338 : vector<2x32xf32>
    %340 = arith.mulf %335, %339 : vector<2x32xf32>
    %341 = arith.truncf %340 : vector<2x32xf32> to vector<2x32xbf16>
    %cst_69 = arith.constant dense<0.000000e+00> : vector<2x128xf32>
    %342 = tpu.matmul %341, %5, %cst_69 {dimension_numbers = #tpu.dot_dimension_numbers<[1], [0], [0], [1], [0, 0, 1, 1], [], []>} : vector<2x32xbf16>, vector<32x128xbf16>, vector<2x128xf32> -> vector<2x128xf32>
    %cst_70 = arith.constant dense<0.000000e+00> : vector<2x128xf32>
    %343 = tpu.matmul %315, %7, %cst_70 {dimension_numbers = #tpu.dot_dimension_numbers<[1], [0], [0], [1], [0, 0, 1, 1], [], []>} : vector<2x32xbf16>, vector<32x128xbf16>, vector<2x128xf32> -> vector<2x128xf32>
    %344 = arith.addf %342, %343 : vector<2x128xf32>
    %345 = vector.broadcast %10 : vector<1x128xf32> to vector<2x128xf32>
    %346 = arith.addf %344, %345 : vector<2x128xf32>
    %347 = arith.negf %346 : vector<2x128xf32>
    %348 = math.exp %347 : vector<2x128xf32>
    %cst_71 = arith.constant 1.000000e+00 : f32
    %349 = vector.broadcast %cst_71 : f32 to vector<2x128xf32>
    %350 = arith.addf %349, %348 : vector<2x128xf32>
    %351 = arith.divf %349, %350 : vector<2x128xf32>
    %352 = vector.extract_strided_slice %351 {offsets = [0, 0], sizes = [2, 32], strides = [1, 1]} : vector<2x128xf32> to vector<2x32xf32>
    %353 = vector.extract_strided_slice %351 {offsets = [0, 32], sizes = [2, 32], strides = [1, 1]} : vector<2x128xf32> to vector<2x32xf32>
    %354 = vector.extract_strided_slice %351 {offsets = [0, 64], sizes = [2, 32], strides = [1, 1]} : vector<2x128xf32> to vector<2x32xf32>
    %cst_72 = arith.constant 2.000000e+00 : f32
    %355 = vector.broadcast %cst_72 : f32 to vector<2x32xf32>
    %356 = arith.mulf %355, %354 : vector<2x32xf32>
    %cst_73 = arith.constant 1.000000e+00 : f32
    %357 = vector.broadcast %cst_73 : f32 to vector<2x32xf32>
    %358 = arith.subf %356, %357 : vector<2x32xf32>
    %359 = vector.extract_strided_slice %351 {offsets = [0, 96], sizes = [2, 32], strides = [1, 1]} : vector<2x128xf32> to vector<2x32xf32>
    %360 = arith.mulf %353, %312 : vector<2x32xf32>
    %361 = arith.mulf %352, %358 : vector<2x32xf32>
    %362 = arith.addf %360, %361 : vector<2x32xf32>
    %363 = math.tanh %362 : vector<2x32xf32>
    %364 = arith.mulf %359, %363 : vector<2x32xf32>
    %365 = arith.truncf %364 : vector<2x32xf32> to vector<2x32xbf16>
    %366 = vector.extract_strided_slice %11 {offsets = [6, 0], sizes = [1, 32], strides = [1, 1]} : vector<8x128xf32> to vector<1x32xf32>
    %367 = vector.broadcast %366 : vector<1x32xf32> to vector<2x32xf32>
    %368 = arith.mulf %364, %367 : vector<2x32xf32>
    %369 = arith.addf %319, %368 : vector<2x32xf32>
    %370 = vector.extract_strided_slice %16 {offsets = [14, 0], sizes = [2, 128], strides = [1, 1]} : vector<16x128xf32> to vector<2x128xf32>
    %cst_74 = arith.constant dense<0.000000e+00> : vector<2x128xf32>
    %371 = tpu.matmul %341, %6, %cst_74 {dimension_numbers = #tpu.dot_dimension_numbers<[1], [0], [0], [1], [0, 0, 1, 1], [], []>} : vector<2x32xbf16>, vector<32x128xbf16>, vector<2x128xf32> -> vector<2x128xf32>
    %372 = arith.addf %370, %371 : vector<2x128xf32>
    %373 = arith.negf %372 : vector<2x128xf32>
    %374 = math.exp %373 : vector<2x128xf32>
    %cst_75 = arith.constant 1.000000e+00 : f32
    %375 = vector.broadcast %cst_75 : f32 to vector<2x128xf32>
    %376 = arith.addf %375, %374 : vector<2x128xf32>
    %377 = arith.divf %375, %376 : vector<2x128xf32>
    %378 = vector.extract_strided_slice %377 {offsets = [0, 0], sizes = [2, 32], strides = [1, 1]} : vector<2x128xf32> to vector<2x32xf32>
    %379 = vector.extract_strided_slice %377 {offsets = [0, 32], sizes = [2, 32], strides = [1, 1]} : vector<2x128xf32> to vector<2x32xf32>
    %380 = vector.extract_strided_slice %377 {offsets = [0, 64], sizes = [2, 32], strides = [1, 1]} : vector<2x128xf32> to vector<2x32xf32>
    %cst_76 = arith.constant 2.000000e+00 : f32
    %381 = vector.broadcast %cst_76 : f32 to vector<2x32xf32>
    %382 = arith.mulf %381, %380 : vector<2x32xf32>
    %cst_77 = arith.constant 1.000000e+00 : f32
    %383 = vector.broadcast %cst_77 : f32 to vector<2x32xf32>
    %384 = arith.subf %382, %383 : vector<2x32xf32>
    %385 = vector.extract_strided_slice %377 {offsets = [0, 96], sizes = [2, 32], strides = [1, 1]} : vector<2x128xf32> to vector<2x32xf32>
    %386 = arith.mulf %379, %338 : vector<2x32xf32>
    %387 = arith.mulf %378, %384 : vector<2x32xf32>
    %388 = arith.addf %386, %387 : vector<2x32xf32>
    %389 = math.tanh %388 : vector<2x32xf32>
    %390 = arith.mulf %385, %389 : vector<2x32xf32>
    %391 = arith.truncf %390 : vector<2x32xf32> to vector<2x32xbf16>
    %cst_78 = arith.constant dense<0.000000e+00> : vector<2x128xf32>
    %392 = tpu.matmul %391, %5, %cst_78 {dimension_numbers = #tpu.dot_dimension_numbers<[1], [0], [0], [1], [0, 0, 1, 1], [], []>} : vector<2x32xbf16>, vector<32x128xbf16>, vector<2x128xf32> -> vector<2x128xf32>
    %cst_79 = arith.constant dense<0.000000e+00> : vector<2x128xf32>
    %393 = tpu.matmul %365, %7, %cst_79 {dimension_numbers = #tpu.dot_dimension_numbers<[1], [0], [0], [1], [0, 0, 1, 1], [], []>} : vector<2x32xbf16>, vector<32x128xbf16>, vector<2x128xf32> -> vector<2x128xf32>
    %394 = arith.addf %392, %393 : vector<2x128xf32>
    %395 = vector.broadcast %10 : vector<1x128xf32> to vector<2x128xf32>
    %396 = arith.addf %394, %395 : vector<2x128xf32>
    %397 = arith.negf %396 : vector<2x128xf32>
    %398 = math.exp %397 : vector<2x128xf32>
    %cst_80 = arith.constant 1.000000e+00 : f32
    %399 = vector.broadcast %cst_80 : f32 to vector<2x128xf32>
    %400 = arith.addf %399, %398 : vector<2x128xf32>
    %401 = arith.divf %399, %400 : vector<2x128xf32>
    %402 = vector.extract_strided_slice %401 {offsets = [0, 0], sizes = [2, 32], strides = [1, 1]} : vector<2x128xf32> to vector<2x32xf32>
    %403 = vector.extract_strided_slice %401 {offsets = [0, 32], sizes = [2, 32], strides = [1, 1]} : vector<2x128xf32> to vector<2x32xf32>
    %404 = vector.extract_strided_slice %401 {offsets = [0, 64], sizes = [2, 32], strides = [1, 1]} : vector<2x128xf32> to vector<2x32xf32>
    %cst_81 = arith.constant 2.000000e+00 : f32
    %405 = vector.broadcast %cst_81 : f32 to vector<2x32xf32>
    %406 = arith.mulf %405, %404 : vector<2x32xf32>
    %cst_82 = arith.constant 1.000000e+00 : f32
    %407 = vector.broadcast %cst_82 : f32 to vector<2x32xf32>
    %408 = arith.subf %406, %407 : vector<2x32xf32>
    %409 = vector.extract_strided_slice %401 {offsets = [0, 96], sizes = [2, 32], strides = [1, 1]} : vector<2x128xf32> to vector<2x32xf32>
    %410 = arith.mulf %403, %362 : vector<2x32xf32>
    %411 = arith.mulf %402, %408 : vector<2x32xf32>
    %412 = arith.addf %410, %411 : vector<2x32xf32>
    %413 = math.tanh %412 : vector<2x32xf32>
    %414 = arith.mulf %409, %413 : vector<2x32xf32>
    %415 = vector.extract_strided_slice %11 {offsets = [7, 0], sizes = [1, 32], strides = [1, 1]} : vector<8x128xf32> to vector<1x32xf32>
    %416 = vector.broadcast %415 : vector<1x32xf32> to vector<2x32xf32>
    %417 = arith.mulf %414, %416 : vector<2x32xf32>
    %418 = arith.addf %369, %417 : vector<2x32xf32>
    %cst_83 = arith.constant dense<0.000000e+00> : vector<2xf32>
    %419 = vector.multi_reduction <add>, %418, %cst_83 [1] : vector<2x32xf32> to vector<2xf32>
    %420 = vector.shape_cast %419 : vector<2xf32> to vector<2x1xf32>
    %421 = vector.broadcast %12 : vector<1x1xf32> to vector<2x1xf32>
    %422 = arith.addf %420, %421 : vector<2x1xf32>
    %c0_84 = arith.constant 0 : index
    %c0_85 = arith.constant 0 : index
    %423 = vector.load %arg3[%c0_84, %c0_85] : memref<2x1xf32, #tpu.memory_space<vmem>>, vector<2x1xf32>
    tpu.vector_store %arg3[%c0_84, %c0_85], %422 {strides = array<i32>} : memref<2x1xf32, #tpu.memory_space<vmem>>, vector<2x1xf32>,
    return
  }
}

</mosaic_0001>

<bundles_post_ra>
// kernel: mood_prediction_forward.1
= control target key start
LH: loop header
LB: loop body
LE: loop exit
PB: predicated region body
PF: predicated region fallthrough
CT: control target
= control target key end

     0   :  { %8 = vsyncpa [#allocation3], 0  ;;  %s2266_s12 = smov [#allocation2]   ;;  %s2694_s0 = inlined_call_operand.vmem [shape: bf16[16,32], index: 0, kind: input, shape index: {}]   ;;  %s2695_s1 = inlined_call_operand.hbm [shape: bf16[2,64,128], index: 1, kind: input, shape index: {}]   ;;  %s2696_s2 = inlined_call_operand.vmem [shape: f32[11,128], index: 2, kind: input, shape index: {}]   ;;  %s2697_s3 = inlined_call_operand.vmem [shape: f32[2,1], index: 3, kind: output, shape index: {}]  }
   0x1   :  { %s16_s13 = sshll.u32 %s2266_s12, 4  ;;  %s17_s13 = int_to_ptr.vmem [resolvable:$true] %s16_s13 }
   0x2   :  { %s2252_s14 = scalar_lea.vmem %s17_s13, 1024  ;;  %p2257_p1 = scmp.lt.s32.totalorder %s17_s13, %s17_s13 }
   0x3   :  { %p2253_p0 = scmp.ne.s32.totalorder %s17_s13, %s2252_s14  ;;  %p2258_p2 = scmp.lt.s32.totalorder %s2252_s14, %s2252_s14 }
   0x5   :  { %p2259_p3 = por %p2258_p2, %p2257_p1 }
   0x7   :  { %p2260_p4 = pnand %p2259_p3, %p2253_p0 }
   0x9   :  { %2263 = shalt.err (!%p2260_p4)
}
   0xa   :  { %s2267_s15 = smov 64   ;;  %s2268_s16 = smov 4  }
   0xb   :  { %22 = dma.hbm_to_vmem [thread:$0]  %s2695_s1, 1024, %s17_s13, [#allocation3], %s2267_s15, %s2267_s15, %s2268_s16  }
   0xc   :  { %2264 = dma.done.wait [#allocation3], 1024  }
   0xd   :  { %2265 = vsyncadd [#allocation3], 4294966272  ;;  %v2269_v0 = vmov 0.0   ;;  %vm2270_vm0 = vmmov 0   ;;  %v2132_v1 = vld [vmem:[#allocation2 + $0x8] sm:$0xff]   ;;  %v2305_v2 = vld [vmem:[#allocation2 + $0x18] sm:$0xff]   ;;  %v50_v7 = vlaneseq }
   0xe   :  { %1924 = vmatprep.subr.bf16.mxu0 %v2269_v0  ;;  %1932 = vmatprep.subr.bf16.mxu1 %v2269_v0  ;;  %v2134_v3 = vld [vmem:[#allocation2] sm:$0xff]   ;;  %v2309_v4 = vld [vmem:[#allocation2 + $0x10] sm:$0xff]   ;;  %vm71_vm1 = vcmask 261120   ;;  %v2271_v6 = vmov 0   ;;  %s2272_s21 = smov 32   ;;  %v2344_v34 = vld [vmem:[#allocation2 + $0x38] sm:$0xff]  }
   0xf   :  { %1928 = vmatprep.mubr.msk.bf16.mxu0 %vm2270_vm0, %v2269_v0  ;;  %1936 = vmatprep.mubr.msk.bf16.mxu1 %vm2270_vm0, %v2269_v0  ;;  %v2136_v5 = vld [vmem:[%s2694_s0] sm:$0xff]   ;;  %v2323_v8 = vshrl.u32 %v50_v7, 7  ;;  %v2346_v35 = vld [vmem:[#allocation2 + $0x28] sm:$0xff]   ;;  %v2349_v36 = vld [vmem:[#allocation2 + $0x30] sm:$0xff]   ;;  %s2273_s24 = smov 96   ;;  %vm1769_vm2 = vcmask 254976  }
  0x10   :  { %1925 = vmatpush3.bf16.msra.mxu0 %v2132_v1  ;;  %1933 = vmatpush3.bf16.msra.mxu1 %v2305_v2  ;;  %v2329_v10 = vld [vmem:[%s2696_s2] sm:$0xff]  ;;  %vm1778_vm3 = vcmask 1024  }
  0x11   :  { %1926 = vmatprep.subr.bf16.mxu0 %v2269_v0  ;;  %1934 = vmatprep.subr.bf16.mxu1 %v2269_v0  ;;  %v52_v9 = vsub.s32 0, %v2323_v8  ;;  %v2352_v37 = vld [vmem:[#allocation2 + $0x20] sm:$0xff]   ;;  %v310_v47 = vsub.s32 1, %v2323_v8 }
  0x13   :  { %v53_v11 = vrot.slane %v2329_v10, %v52_v9  ;;  %v2386_v48 = vrot.slane %v2329_v10, %v310_v47 }
  0x14   :  { %1927 = vmatpush3.bf16.msra.mxu0 %v2134_v3  ;;  %1935 = vmatpush3.bf16.msra.mxu1 %v2309_v4 }
  0x15   :  { %1940 = vmatprep.subr.bf16.mxu0 %v2269_v0  ;;  %1948 = vmatprep.subr.bf16.mxu1 %v2269_v0 }
  0x17   :  { %1929 = vmatmul.mubr.msk.bf16.vlgmr.msra.gmra.mxu0 %vm71_vm1, %v2136_v5  ;;  %1937 = vmatmul.mubr.bf16.vlgmr.msra.gmra.mxu1 %v2271_v6 }
  0x18   :  { %1944 = vmatprep.mubr.msk.bf16.mxu0 %vm2270_vm0, %v2269_v0  ;;  %1952 = vmatprep.mubr.msk.bf16.mxu1 %vm2270_vm0, %v2269_v0 }
  0x19   :  { %1941 = vmatpush3.bf16.msra.mxu0 %v2344_v34  ;;  %1949 = vmatpush3.bf16.msra.mxu1 %v2346_v35 }
  0x1a   :  { %1942 = vmatprep.subr.bf16.mxu0 %v2269_v0  ;;  %1950 = vmatprep.subr.bf16.mxu1 %v2269_v0 }
  0x1d   :  { %1943 = vmatpush3.bf16.msra.mxu0 %v2349_v36  ;;  %1951 = vmatpush3.bf16.msra.mxu1 %v2352_v37 }
  0x1e   :  { %1956 = vmatprep.subr.bf16.mxu0 %v2269_v0  ;;  %1964 = vmatprep.subr.bf16.mxu1 %v2269_v0 }
  0x20   :  { %1945 = vmatmul.mubr.bf16.vlgmr.msra.gmra.mxu0 %v2271_v6 }
  0x21   :  { %1957 = vmatpush3.bf16.msra.mxu0 %v2305_v2  ;;  %1960 = vmatprep.mubr.msk.bf16.mxu0 %vm2270_vm0, %v2269_v0 }
  0x22   :  { %1958 = vmatprep.subr.bf16.mxu0 %v2269_v0 }
  0x25   :  { %1959 = vmatpush3.bf16.msra.mxu0 %v2309_v4 }
  0x26   :  { %1972 = vmatprep.subr.bf16.mxu0 %v2269_v0 }
  0xd7   :  { %v109_v12 = vpop.f32.mrf.mxu0  ;;  %v165_v14 = vpop.f32.mrf.mxu1 }
  0xd8   :  { %v2334_v13 = vadd.f32 %v109_v12, %v53_v11 }
  0xd9   :  { %v1930_v15 = vpop.f32.mrf.mxu0  ;;  %v1938_v17 = vpop.f32.mrf.mxu1 }
  0xda   :  { %v171_v16 = vadd.f32 %v165_v14, %v2334_v13 }
  0xdb   :  { %v112_v18 = vpop.f32.mrf.mxu0  ;;  %v168_v21 = vpop.f32.mrf.mxu1 }
  0xdc   :  { %v1791_v19 = vmul.f32 -1.442695, %v171_v16  ;;  %v2337_v20 = vadd.f32 %v112_v18, %v53_v11 }
  0xdd   :  { %v1931_v22 = vpop.f32.mrf.mxu0  ;;  %v1939_v23 = vpop.f32.mrf.mxu1 }
  0xde   :  { %2141 = vpow2.f32 %v1791_v19 }
  0xe0   :  { %v244_v42 = vpop.f32.mrf.mxu0 }
  0xe2   :  { %v1946_v43 = vpop.f32.mrf.mxu0 }
  0xe4   :  { %v247_v44 = vpop.f32.mrf.mxu0 }
  0xe6   :  { %v1947_v45 = vpop.f32.mrf.mxu0 }
  0xeb   :  { %v2142_v24 = vpop.eup %2141 }
  0xec   :  { %v175_v25 = vadd.f32 1.0, %v2142_v24 }
  0xee   :  { %2143 = vrcp.f32 %v175_v25 }
  0xfb   :  { %v2144_v26 = vpop.eup %2143 }
  0xfc   :  { %v178_v27 = vmul.f32 2.0, %v2144_v26  ;;  %v180_v31 = vmul.f32 0.0, %v2144_v26 }
  0xfe   :  { %v1792_v28 = vadd.f32 -1.0, %v178_v27 }
 0x100   :  { %182 = vrot.lane.b32.xlu0 %v1792_v28, %s2267_s15 }
 0x172   :  { %v183_v29 = vpop.permute.xlu0 %182 }
 0x173   :  { %v185_v30 = vmul.f32 %v2144_v26, %v183_v29 }
 0x175   :  { %187 = vrot.lane.b32.xlu0 %v185_v30, %s2272_s21 }
 0x1e7   :  { %v188_v32 = vpop.permute.xlu0 %187 }
 0x1e8   :  { %v2341_v33 = vadd.f32 %v188_v32, %v180_v31 }
 0x1ea   :  { %2145 = vtanh.f32 %v2341_v33  ;;  %v402_v19 = vrot.slane %v2341_v33, 6 }
 0x1f7   :  { %v2146_v38 = vpop.eup %2145 }
 0x1f8   :  { %193 = vrot.lane.b32.xlu1 %v2146_v38, %s2267_s15 }
 0x26a   :  { %v194_v39 = vpop.permute.xlu1 %193 }
 0x26b   :  { %v196_v40 = vmul.f32 %v2144_v26, %v194_v39 }
 0x26d   :  { %v197_v41 = vpack.c.bf16 %v196_v40, %v196_v40 }
 0x26f   :  { %251 = vrot.lane.b32.xlu1 %v197_v41, %s2272_s21 }
 0x2e1   :  { %v252_v46 = vpop.permute.xlu1 %251 }
 0x2e2   :  { %1953 = vmatmul.mubr.msk.bf16.vlgmr.msra.gmra.mxu1 %vm71_vm1, %v252_v46  ;;  %1961 = vmatmul.mubr.msk.bf16.vlgmr.msra.gmra.mxu0 %vm71_vm1, %v252_v46 }
 0x2e3   :  { %1965 = vmatpush3.bf16.msra.mxu1 %v2344_v34  ;;  %1973 = vmatpush3.bf16.msra.mxu0 %v2346_v35 }
 0x2e4   :  { %1966 = vmatprep.subr.bf16.mxu1 %v2269_v0  ;;  %1974 = vmatprep.subr.bf16.mxu0 %v2269_v0 }
 0x2e5   :  { %1968 = vmatprep.mubr.msk.bf16.mxu1 %vm2270_vm0, %v2269_v0  ;;  %1976 = vmatprep.mubr.msk.bf16.mxu0 %vm2270_vm0, %v2269_v0 }
 0x2e7   :  { %1967 = vmatpush3.bf16.msra.mxu1 %v2349_v36  ;;  %1975 = vmatpush3.bf16.msra.mxu0 %v2352_v37 }
 0x2e8   :  { %1980 = vmatprep.subr.bf16.mxu1 %v2269_v0  ;;  %1988 = vmatprep.subr.bf16.mxu0 %v2269_v0 }
 0x3a2   :  { %v302_v49 = vpop.f32.mrf.mxu1  ;;  %v383_v50 = vpop.f32.mrf.mxu0 }
 0x3a3   :  { %v303_v51 = vadd.f32 %v302_v49, %v244_v42  ;;  %v390_v52 = vrot.slane %v383_v50, 6 }
 0x3a4   :  { %v1954_v53 = vpop.f32.mrf.mxu1  ;;  %v1962_v54 = vpop.f32.mrf.mxu0 }
 0x3a5   :  { %v312_v55 = vadd.f32 %v2386_v48, %v303_v51  ;;  %v392_v56 = vadd.f32 %v390_v52, %v2334_v13 }
 0x3a6   :  { %v305_v57 = vpop.f32.mrf.mxu1  ;;  %v386_v58 = vpop.f32.mrf.mxu0 }
 0x3a7   :  { %v1798_v59 = vmul.f32 -1.442695, %v312_v55  ;;  %v1801_v60 = vmul.f32 -1.442695, %v392_v56 }
 0x3a8   :  { %v1955_v61 = vpop.f32.mrf.mxu1  ;;  %v1963_v62 = vpop.f32.mrf.mxu0 }
 0x3a9   :  { %2147 = vpow2.f32 %v1798_v59 }
 0x3aa   :  { %2149 = vpow2.f32 %v1801_v60 }
 0x3b6   :  { %v2148_v63 = vpop.eup %2147 }
 0x3b7   :  { %v2150_v1 = vpop.eup %2149  ;;  %v316_v3 = vadd.f32 1.0, %v2148_v63 }
 0x3b8   :  { %v396_v5 = vadd.f32 1.0, %v2150_v1 }
 0x3b9   :  { %2151 = vrcp.f32 %v316_v3 }
 0x3ba   :  { %2153 = vrcp.f32 %v396_v5 }
 0x3c6   :  { %v2152_v6 = vpop.eup %2151 }
 0x3c7   :  { %v2154_v7 = vpop.eup %2153  ;;  %v319_v10 = vmul.f32 2.0, %v2152_v6  ;;  %v321_v21 = vmul.f32 0.0, %v2152_v6 }
 0x3c8   :  { %v399_v11 = vmul.f32 2.0, %v2154_v7  ;;  %v404_v23 = vmul.f32 %v2154_v7, %v402_v19 }
 0x3c9   :  { %v1799_v12 = vadd.f32 -1.0, %v319_v10 }
 0x3ca   :  { %v1802_v14 = vadd.f32 -1.0, %v399_v11 }
 0x3cb   :  { %323 = vrot.lane.b32.xlu0 %v1799_v12, %s2267_s15 }
 0x3cc   :  { %406 = vrot.lane.b32.xlu1 %v1802_v14, %s2267_s15 }
 0x43d   :  { %v324_v15 = vpop.permute.xlu0 %323 }
 0x43e   :  { %v326_v16 = vmul.f32 %v2152_v6, %v324_v15  ;;  %v407_v17 = vpop.permute.xlu1 %406 }
 0x43f   :  { %v409_v18 = vmul.f32 %v2154_v7, %v407_v17 }
 0x440   :  { %328 = vrot.lane.b32.xlu0 %v326_v16, %s2272_s21 }
 0x441   :  { %411 = vrot.lane.b32.xlu1 %v409_v18, %s2272_s21 }
 0x4b2   :  { %v329_v22 = vpop.permute.xlu0 %328 }
 0x4b3   :  { %v2395_v24 = vadd.f32 %v329_v22, %v321_v21  ;;  %v412_v25 = vpop.permute.xlu1 %411 }
 0x4b4   :  { %v2397_v26 = vadd.f32 %v412_v25, %v404_v23 }
 0x4b5   :  { %2155 = vtanh.f32 %v2395_v24 }
 0x4b6   :  { %2157 = vtanh.f32 %v2397_v26  ;;  %v605_v22 = vrot.slane %v2397_v26, 6 }
 0x4c2   :  { %v2156_v27 = vpop.eup %2155 }
 0x4c3   :  { %v2158_v28 = vpop.eup %2157  ;;  %334 = vrot.lane.b32.xlu0 %v2156_v27, %s2267_s15 }
 0x4c4   :  { %417 = vrot.lane.b32.xlu1 %v2158_v28, %s2267_s15 }
 0x535   :  { %v335_v29 = vpop.permute.xlu0 %334 }
 0x536   :  { %v2403_v30 = vmul.f32 %v2152_v6, %v335_v29  ;;  %v418_v31 = vpop.permute.xlu1 %417 }
 0x537   :  { %v420_v32 = vmul.f32 %v2154_v7, %v418_v31 }
 0x538   :  { %v338_v33 = vpack.c.bf16 %v2403_v30, %v2403_v30 }
 0x539   :  { %v421_v38 = vpack.c.bf16 %v420_v32, %v420_v32 }
 0x53a   :  { %423 = vrot.lane.b32.xlu0 %v338_v33, %s2272_s21 }
 0x53b   :  { %v469_v39 = vrot.slane %v421_v38, 1 }
 0x53d   :  { %470 = vrot.lane.b32.xlu1 %v469_v39, %s2272_s21 }
 0x5ac   :  { %v424_v40 = vpop.permute.xlu0 %423 }
 0x5ad   :  { %1969 = vmatmul.mubr.msk.bf16.vlgmr.msra.gmra.mxu1 %vm71_vm1, %v424_v40 }
 0x5ae   :  { %1981 = vmatpush3.bf16.msra.mxu1 %v2305_v2  ;;  %1984 = vmatprep.mubr.msk.bf16.mxu1 %vm2270_vm0, %v2269_v0 }
 0x5af   :  { %v471_v41 = vpop.permute.xlu1 %470  ;;  %1982 = vmatprep.subr.bf16.mxu1 %v2269_v0 }
 0x5b0   :  { %1977 = vmatmul.mubr.msk.bf16.vlgmr.msra.gmra.mxu0 %vm71_vm1, %v471_v41 }
 0x5b1   :  { %1989 = vmatpush3.bf16.msra.mxu0 %v2344_v34  ;;  %1992 = vmatprep.mubr.msk.bf16.mxu0 %vm2270_vm0, %v2269_v0 }
 0x5b2   :  { %1983 = vmatpush3.bf16.msra.mxu1 %v2309_v4  ;;  %1990 = vmatprep.subr.bf16.mxu0 %v2269_v0 }
 0x5b3   :  { %1996 = vmatprep.subr.bf16.mxu1 %v2269_v0 }
 0x5b5   :  { %1985 = vmatmul.mubr.msk.bf16.vlgmr.msra.gmra.mxu1 %vm71_vm1, %v471_v41  ;;  %1991 = vmatpush3.bf16.msra.mxu0 %v2349_v36 }
 0x5b6   :  { %2004 = vmatprep.subr.bf16.mxu0 %v2269_v0  ;;  %1997 = vmatpush3.bf16.msra.mxu1 %v2346_v35 }
 0x5b7   :  { %1998 = vmatprep.subr.bf16.mxu1 %v2269_v0  ;;  %2000 = vmatprep.mubr.msk.bf16.mxu1 %vm2270_vm0, %v2269_v0 }
 0x5ba   :  { %1999 = vmatpush3.bf16.msra.mxu1 %v2352_v37 }
 0x5bb   :  { %2012 = vmatprep.subr.bf16.mxu1 %v2269_v0 }
 0x66d   :  { %v462_v42 = vpop.f32.mrf.mxu1 }
 0x66f   :  { %v1970_v43 = vpop.f32.mrf.mxu1 }
 0x670   :  { %v509_v44 = vpop.f32.mrf.mxu0 }
 0x671   :  { %v510_v45 = vadd.f32 %v509_v44, %v462_v42  ;;  %v465_v46 = vpop.f32.mrf.mxu1 }
 0x672   :  { %v1978_v49 = vpop.f32.mrf.mxu0 }
 0x673   :  { %v515_v50 = vadd.f32 %v510_v45, %v2386_v48  ;;  %v1971_v51 = vpop.f32.mrf.mxu1 }
 0x674   :  { %v512_v52 = vpop.f32.mrf.mxu0 }
 0x675   :  { %v1805_v53 = vmul.f32 -1.442695, %v515_v50  ;;  %v586_v54 = vpop.f32.mrf.mxu1 }
 0x676   :  { %v1979_v55 = vpop.f32.mrf.mxu0  ;;  %v593_v56 = vrot.slane %v586_v54, 4 }
 0x677   :  { %2159 = vpow2.f32 %v1805_v53  ;;  %v1986_v57 = vpop.f32.mrf.mxu1 }
 0x678   :  { %v595_v58 = vadd.f32 %v593_v56, %v2334_v13 }
 0x679   :  { %v589_v59 = vpop.f32.mrf.mxu1 }
 0x67a   :  { %v1808_v60 = vmul.f32 -1.442695, %v595_v58 }
 0x67b   :  { %v1987_v61 = vpop.f32.mrf.mxu1 }
 0x67c   :  { %2161 = vpow2.f32 %v1808_v60 }
 0x684   :  { %v2160_v62 = vpop.eup %2159 }
 0x685   :  { %v519_v63 = vadd.f32 1.0, %v2160_v62 }
 0x687   :  { %2163 = vrcp.f32 %v519_v63 }
 0x689   :  { %v2162_v1 = vpop.eup %2161 }
 0x68a   :  { %v599_v3 = vadd.f32 1.0, %v2162_v1 }
 0x68c   :  { %2165 = vrcp.f32 %v599_v3 }
 0x694   :  { %v2164_v5 = vpop.eup %2163 }
 0x695   :  { %v522_v6 = vmul.f32 2.0, %v2164_v5  ;;  %v524_v18 = vmul.f32 %v2164_v5, %v2395_v24 }
 0x697   :  { %v1806_v7 = vadd.f32 -1.0, %v522_v6 }
 0x699   :  { %v2166_v10 = vpop.eup %2165  ;;  %526 = vrot.lane.b32.xlu0 %v1806_v7, %s2267_s15 }
 0x69a   :  { %v602_v11 = vmul.f32 2.0, %v2166_v10  ;;  %v607_v23 = vmul.f32 %v2166_v10, %v605_v22 }
 0x69c   :  { %v1809_v12 = vadd.f32 -1.0, %v602_v11 }
 0x69e   :  { %609 = vrot.lane.b32.xlu1 %v1809_v12, %s2267_s15 }
 0x70b   :  { %v527_v14 = vpop.permute.xlu0 %526 }
 0x70c   :  { %v529_v15 = vmul.f32 %v2164_v5, %v527_v14 }
 0x70e   :  { %531 = vrot.lane.b32.xlu0 %v529_v15, %s2272_s21 }
 0x710   :  { %v610_v16 = vpop.permute.xlu1 %609 }
 0x711   :  { %v612_v17 = vmul.f32 %v2166_v10, %v610_v16 }
 0x713   :  { %614 = vrot.lane.b32.xlu1 %v612_v17, %s2272_s21 }
 0x780   :  { %v532_v19 = vpop.permute.xlu0 %531 }
 0x781   :  { %v2437_v21 = vadd.f32 %v532_v19, %v524_v18 }
 0x783   :  { %2167 = vtanh.f32 %v2437_v21 }
 0x785   :  { %v615_v25 = vpop.permute.xlu1 %614 }
 0x786   :  { %v2441_v27 = vadd.f32 %v615_v25, %v607_v23 }
 0x788   :  { %2169 = vtanh.f32 %v2441_v27  ;;  %v808_v17 = vrot.slane %v2441_v27, 6 }
 0x790   :  { %v2168_v28 = vpop.eup %2167 }
 0x791   :  { %537 = vrot.lane.b32.xlu0 %v2168_v28, %s2267_s15 }
 0x795   :  { %v2170_v29 = vpop.eup %2169 }
 0x796   :  { %620 = vrot.lane.b32.xlu1 %v2170_v29, %s2267_s15 }
 0x803   :  { %v538_v24 = vpop.permute.xlu0 %537 }
 0x804   :  { %v2446_v31 = vmul.f32 %v2164_v5, %v538_v24 }
 0x806   :  { %v541_v26 = vpack.c.bf16 %v2446_v31, %v2446_v31 }
 0x808   :  { %626 = vrot.lane.b32.xlu0 %v541_v26, %s2272_s21  ;;  %v621_v32 = vpop.permute.xlu1 %620 }
 0x809   :  { %v623_v33 = vmul.f32 %v2166_v10, %v621_v32 }
 0x80b   :  { %v624_v38 = vpack.c.bf16 %v623_v33, %v623_v33 }
 0x80d   :  { %v672_v39 = vrot.slane %v624_v38, 2 }
 0x80f   :  { %673 = vrot.lane.b32.xlu1 %v672_v39, %s2272_s21 }
 0x87a   :  { %v627_v40 = vpop.permute.xlu0 %626 }
 0x87b   :  { %1993 = vmatmul.mubr.msk.bf16.vlgmr.msra.gmra.mxu0 %vm71_vm1, %v627_v40 }
 0x87c   :  { %2005 = vmatpush3.bf16.msra.mxu0 %v2305_v2  ;;  %2008 = vmatprep.mubr.msk.bf16.mxu0 %vm2270_vm0, %v2269_v0 }
 0x87d   :  { %2006 = vmatprep.subr.bf16.mxu0 %v2269_v0 }
 0x880   :  { %2007 = vmatpush3.bf16.msra.mxu0 %v2309_v4 }
 0x881   :  { %v674_v41 = vpop.permute.xlu1 %673  ;;  %2020 = vmatprep.subr.bf16.mxu0 %v2269_v0 }
 0x882   :  { %2001 = vmatmul.mubr.msk.bf16.vlgmr.msra.gmra.mxu1 %vm71_vm1, %v674_v41 }
 0x883   :  { %2009 = vmatmul.mubr.msk.bf16.vlgmr.msra.gmra.mxu0 %vm71_vm1, %v674_v41  ;;  %2013 = vmatpush3.bf16.msra.mxu1 %v2344_v34 }
 0x884   :  { %2021 = vmatpush3.bf16.msra.mxu0 %v2346_v35  ;;  %2014 = vmatprep.subr.bf16.mxu1 %v2269_v0 }
 0x885   :  { %2022 = vmatprep.subr.bf16.mxu0 %v2269_v0  ;;  %2016 = vmatprep.mubr.msk.bf16.mxu1 %vm2270_vm0, %v2269_v0 }
 0x886   :  { %2024 = vmatprep.mubr.msk.bf16.mxu0 %vm2270_vm0, %v2269_v0 }
 0x887   :  { %2015 = vmatpush3.bf16.msra.mxu1 %v2349_v36 }
 0x888   :  { %2023 = vmatpush3.bf16.msra.mxu0 %v2352_v37  ;;  %2028 = vmatprep.subr.bf16.mxu1 %v2269_v0 }
 0x889   :  { %2036 = vmatprep.subr.bf16.mxu0 %v2269_v0 }
 0x93b   :  { %v665_v42 = vpop.f32.mrf.mxu0 }
 0x93d   :  { %v1994_v43 = vpop.f32.mrf.mxu0 }
 0x93f   :  { %v668_v44 = vpop.f32.mrf.mxu0 }
 0x941   :  { %v1995_v45 = vpop.f32.mrf.mxu0 }
 0x942   :  { %v712_v46 = vpop.f32.mrf.mxu1 }
 0x943   :  { %v713_v49 = vadd.f32 %v712_v46, %v665_v42  ;;  %v789_v50 = vpop.f32.mrf.mxu0 }
 0x944   :  { %v796_v51 = vrot.slane %v789_v50, 2  ;;  %v2002_v52 = vpop.f32.mrf.mxu1 }
 0x945   :  { %v718_v53 = vadd.f32 %v713_v49, %v2386_v48  ;;  %v2010_v54 = vpop.f32.mrf.mxu0 }
 0x946   :  { %v798_v55 = vadd.f32 %v796_v51, %v2334_v13  ;;  %v715_v56 = vpop.f32.mrf.mxu1 }
 0x947   :  { %v1812_v57 = vmul.f32 -1.442695, %v718_v53  ;;  %v792_v58 = vpop.f32.mrf.mxu0 }
 0x948   :  { %v1815_v59 = vmul.f32 -1.442695, %v798_v55  ;;  %v2003_v60 = vpop.f32.mrf.mxu1 }
 0x949   :  { %2171 = vpow2.f32 %v1812_v57  ;;  %v2011_v61 = vpop.f32.mrf.mxu0 }
 0x94a   :  { %2173 = vpow2.f32 %v1815_v59 }
 0x956   :  { %v2172_v62 = vpop.eup %2171 }
 0x957   :  { %v2174_v63 = vpop.eup %2173  ;;  %v722_v1 = vadd.f32 1.0, %v2172_v62 }
 0x958   :  { %v802_v3 = vadd.f32 1.0, %v2174_v63 }
 0x959   :  { %2175 = vrcp.f32 %v722_v1 }
 0x95a   :  { %2177 = vrcp.f32 %v802_v3 }
 0x966   :  { %v2176_v5 = vpop.eup %2175 }
 0x967   :  { %v2178_v6 = vpop.eup %2177  ;;  %v725_v7 = vmul.f32 2.0, %v2176_v5  ;;  %v727_v18 = vmul.f32 %v2176_v5, %v2437_v21 }
 0x968   :  { %v805_v10 = vmul.f32 2.0, %v2178_v6  ;;  %v810_v22 = vmul.f32 %v2178_v6, %v808_v17 }
 0x969   :  { %v1813_v11 = vadd.f32 -1.0, %v725_v7 }
 0x96a   :  { %v1816_v13 = vadd.f32 -1.0, %v805_v10 }
 0x96b   :  { %729 = vrot.lane.b32.xlu1 %v1813_v11, %s2267_s15 }
 0x96c   :  { %812 = vrot.lane.b32.xlu0 %v1816_v13, %s2267_s15 }
 0x9dd   :  { %v730_v12 = vpop.permute.xlu1 %729 }
 0x9de   :  { %v732_v14 = vmul.f32 %v2176_v5, %v730_v12  ;;  %v813_v15 = vpop.permute.xlu0 %812 }
 0x9df   :  { %v815_v16 = vmul.f32 %v2178_v6, %v813_v15 }
 0x9e0   :  { %734 = vrot.lane.b32.xlu1 %v732_v14, %s2272_s21 }
 0x9e1   :  { %817 = vrot.lane.b32.xlu0 %v815_v16, %s2272_s21 }
 0xa52   :  { %v735_v19 = vpop.permute.xlu1 %734 }
 0xa53   :  { %v2481_v23 = vadd.f32 %v735_v19, %v727_v18  ;;  %v818_v25 = vpop.permute.xlu0 %817 }
 0xa54   :  { %v2483_v28 = vadd.f32 %v818_v25, %v810_v22 }
 0xa55   :  { %2179 = vtanh.f32 %v2481_v23 }
 0xa56   :  { %2181 = vtanh.f32 %v2483_v28  ;;  %v1008_v17 = vrot.slane %v2483_v28, 6 }
 0xa62   :  { %v2180_v29 = vpop.eup %2179 }
 0xa63   :  { %v2182_v24 = vpop.eup %2181  ;;  %740 = vrot.lane.b32.xlu1 %v2180_v29, %s2267_s15 }
 0xa64   :  { %823 = vrot.lane.b32.xlu0 %v2182_v24, %s2267_s15 }
 0xad5   :  { %v741_v27 = vpop.permute.xlu1 %740 }
 0xad6   :  { %v2489_v26 = vmul.f32 %v2176_v5, %v741_v27  ;;  %v824_v21 = vpop.permute.xlu0 %823 }
 0xad7   :  { %v826_v32 = vmul.f32 %v2178_v6, %v824_v21 }
 0xad8   :  { %v744_v33 = vpack.c.bf16 %v2489_v26, %v2489_v26 }
 0xad9   :  { %v827_v38 = vpack.c.bf16 %v826_v32, %v826_v32 }
 0xada   :  { %829 = vrot.lane.b32.xlu0 %v744_v33, %s2272_s21 }
 0xadb   :  { %v875_v39 = vrot.slane %v827_v38, 3 }
 0xadd   :  { %876 = vrot.lane.b32.xlu1 %v875_v39, %s2272_s21 }
 0xb4c   :  { %v830_v40 = vpop.permute.xlu0 %829 }
 0xb4d   :  { %2017 = vmatmul.mubr.msk.bf16.vlgmr.msra.gmra.mxu1 %vm71_vm1, %v830_v40 }
 0xb4e   :  { %2029 = vmatpush3.bf16.msra.mxu1 %v2305_v2  ;;  %2032 = vmatprep.mubr.msk.bf16.mxu1 %vm2270_vm0, %v2269_v0 }
 0xb4f   :  { %v877_v41 = vpop.permute.xlu1 %876  ;;  %2030 = vmatprep.subr.bf16.mxu1 %v2269_v0 }
 0xb50   :  { %2025 = vmatmul.mubr.msk.bf16.vlgmr.msra.gmra.mxu0 %vm71_vm1, %v877_v41 }
 0xb51   :  { %2037 = vmatpush3.bf16.msra.mxu0 %v2344_v34  ;;  %2040 = vmatprep.mubr.msk.bf16.mxu0 %vm2270_vm0, %v2269_v0 }
 0xb52   :  { %2031 = vmatpush3.bf16.msra.mxu1 %v2309_v4  ;;  %2038 = vmatprep.subr.bf16.mxu0 %v2269_v0 }
 0xb53   :  { %2044 = vmatprep.subr.bf16.mxu1 %v2269_v0 }
 0xb55   :  { %2033 = vmatmul.mubr.msk.bf16.vlgmr.msra.gmra.mxu1 %vm71_vm1, %v877_v41  ;;  %2039 = vmatpush3.bf16.msra.mxu0 %v2349_v36 }
 0xb56   :  { %2045 = vmatpush3.bf16.msra.mxu1 %v2346_v35  ;;  %2052 = vmatprep.subr.bf16.mxu0 %v2269_v0 }
 0xb57   :  { %2046 = vmatprep.subr.bf16.mxu1 %v2269_v0  ;;  %2048 = vmatprep.mubr.msk.bf16.mxu1 %vm2270_vm0, %v2269_v0 }
 0xb5a   :  { %2047 = vmatpush3.bf16.msra.mxu1 %v2352_v37 }
 0xb5b   :  { %2060 = vmatprep.subr.bf16.mxu1 %v2269_v0 }
 0xc0d   :  { %v868_v42 = vpop.f32.mrf.mxu1 }
 0xc0f   :  { %v2018_v43 = vpop.f32.mrf.mxu1 }
 0xc10   :  { %v915_v44 = vpop.f32.mrf.mxu0 }
 0xc11   :  { %v916_v45 = vadd.f32 %v915_v44, %v868_v42  ;;  %v871_v46 = vpop.f32.mrf.mxu1 }
 0xc12   :  { %v2026_v49 = vpop.f32.mrf.mxu0 }
 0xc13   :  { %v921_v50 = vadd.f32 %v916_v45, %v2386_v48  ;;  %v2019_v51 = vpop.f32.mrf.mxu1 }
 0xc14   :  { %v918_v52 = vpop.f32.mrf.mxu0 }
 0xc15   :  { %v1819_v53 = vmul.f32 -1.442695, %v921_v50  ;;  %v992_v54 = vpop.f32.mrf.mxu1 }
 0xc16   :  { %v2027_v55 = vpop.f32.mrf.mxu0  ;;  %v998_v56 = vadd.f32 %v992_v54, %v2337_v20 }
 0xc17   :  { %2183 = vpow2.f32 %v1819_v53  ;;  %v2034_v57 = vpop.f32.mrf.mxu1 }
 0xc18   :  { %v1822_v58 = vmul.f32 -1.442695, %v998_v56 }
 0xc19   :  { %v995_v59 = vpop.f32.mrf.mxu1 }
 0xc1a   :  { %2185 = vpow2.f32 %v1822_v58 }
 0xc1b   :  { %v2035_v60 = vpop.f32.mrf.mxu1 }
 0xc24   :  { %v2184_v61 = vpop.eup %2183 }
 0xc25   :  { %v925_v62 = vadd.f32 1.0, %v2184_v61 }
 0xc27   :  { %v2186_v63 = vpop.eup %2185  ;;  %2187 = vrcp.f32 %v925_v62 }
 0xc28   :  { %v1002_v1 = vadd.f32 1.0, %v2186_v63 }
 0xc2a   :  { %2189 = vrcp.f32 %v1002_v1 }
 0xc34   :  { %v2188_v3 = vpop.eup %2187 }
 0xc35   :  { %v928_v5 = vmul.f32 2.0, %v2188_v3  ;;  %v930_v16 = vmul.f32 %v2188_v3, %v2481_v23 }
 0xc37   :  { %v2190_v6 = vpop.eup %2189  ;;  %v1820_v7 = vadd.f32 -1.0, %v928_v5 }
 0xc38   :  { %v1005_v10 = vmul.f32 2.0, %v2190_v6  ;;  %v1010_v22 = vmul.f32 %v2190_v6, %v1008_v17 }
 0xc39   :  { %932 = vrot.lane.b32.xlu0 %v1820_v7, %s2267_s15 }
 0xc3a   :  { %v1823_v11 = vadd.f32 -1.0, %v1005_v10 }
 0xc3c   :  { %1012 = vrot.lane.b32.xlu1 %v1823_v11, %s2267_s15 }
 0xcab   :  { %v933_v13 = vpop.permute.xlu0 %932 }
 0xcac   :  { %v935_v12 = vmul.f32 %v2188_v3, %v933_v13 }
 0xcae   :  { %937 = vrot.lane.b32.xlu0 %v935_v12, %s2272_s21  ;;  %v1013_v14 = vpop.permute.xlu1 %1012 }
 0xcaf   :  { %v1015_v15 = vmul.f32 %v2190_v6, %v1013_v14 }
 0xcb1   :  { %1017 = vrot.lane.b32.xlu1 %v1015_v15, %s2272_s21 }
 0xd20   :  { %v938_v18 = vpop.permute.xlu0 %937 }
 0xd21   :  { %v2524_v19 = vadd.f32 %v938_v18, %v930_v16 }
 0xd23   :  { %2191 = vtanh.f32 %v2524_v19  ;;  %v1018_v25 = vpop.permute.xlu1 %1017 }
 0xd24   :  { %v2527_v29 = vadd.f32 %v1018_v25, %v1010_v22 }
 0xd26   :  { %2193 = vtanh.f32 %v2527_v29  ;;  %v1210_v22 = vrot.slane %v2527_v29, 6 }
 0xd30   :  { %v2192_v24 = vpop.eup %2191 }
 0xd31   :  { %943 = vrot.lane.b32.xlu0 %v2192_v24, %s2267_s15 }
 0xd33   :  { %v2194_v27 = vpop.eup %2193 }
 0xd34   :  { %1023 = vrot.lane.b32.xlu1 %v2194_v27, %s2267_s15 }
 0xda3   :  { %v944_v23 = vpop.permute.xlu0 %943 }
 0xda4   :  { %v2532_v21 = vmul.f32 %v2188_v3, %v944_v23 }
 0xda6   :  { %v947_v28 = vpack.c.bf16 %v2532_v21, %v2532_v21  ;;  %v1024_v32 = vpop.permute.xlu1 %1023 }
 0xda7   :  { %v1026_v33 = vmul.f32 %v2190_v6, %v1024_v32 }
 0xda8   :  { %1029 = vrot.lane.b32.xlu0 %v947_v28, %s2272_s21 }
 0xda9   :  { %v1027_v38 = vpack.c.bf16 %v1026_v33, %v1026_v33 }
 0xdab   :  { %1075 = vrot.lane.b32.xlu1 %v1027_v38, %s2272_s21 }
 0xe1a   :  { %v1030_v39 = vpop.permute.xlu0 %1029 }
 0xe1b   :  { %2041 = vmatmul.mubr.msk.bf16.vlgmr.msra.gmra.mxu0 %vm71_vm1, %v1030_v39 }
 0xe1c   :  { %2053 = vmatpush3.bf16.msra.mxu0 %v2305_v2  ;;  %2056 = vmatprep.mubr.msk.bf16.mxu0 %vm2270_vm0, %v2269_v0 }
 0xe1d   :  { %v1076_v40 = vpop.permute.xlu1 %1075  ;;  %2054 = vmatprep.subr.bf16.mxu0 %v2269_v0 }
 0xe1e   :  { %2049 = vmatmul.mubr.msk.bf16.vlgmr.msra.gmra.mxu1 %vm71_vm1, %v1076_v40 }
 0xe1f   :  { %2061 = vmatpush3.bf16.msra.mxu1 %v2344_v34  ;;  %2064 = vmatprep.mubr.msk.bf16.mxu1 %vm2270_vm0, %v2269_v0 }
 0xe20   :  { %2055 = vmatpush3.bf16.msra.mxu0 %v2309_v4  ;;  %2062 = vmatprep.subr.bf16.mxu1 %v2269_v0 }
 0xe21   :  { %2068 = vmatprep.subr.bf16.mxu0 %v2269_v0 }
 0xe23   :  { %2057 = vmatmul.mubr.msk.bf16.vlgmr.msra.gmra.mxu0 %vm71_vm1, %v1076_v40  ;;  %2063 = vmatpush3.bf16.msra.mxu1 %v2349_v36 }
 0xe24   :  { %2069 = vmatpush3.bf16.msra.mxu0 %v2346_v35  ;;  %2076 = vmatprep.subr.bf16.mxu1 %v2269_v0 }
 0xe25   :  { %2070 = vmatprep.subr.bf16.mxu0 %v2269_v0  ;;  %2072 = vmatprep.mubr.msk.bf16.mxu0 %vm2270_vm0, %v2269_v0 }
 0xe28   :  { %2071 = vmatpush3.bf16.msra.mxu0 %v2352_v37 }
 0xe29   :  { %2084 = vmatprep.subr.bf16.mxu0 %v2269_v0 }
 0xedb   :  { %v1068_v41 = vpop.f32.mrf.mxu0 }
 0xedd   :  { %v2042_v42 = vpop.f32.mrf.mxu0 }
 0xede   :  { %v1114_v43 = vpop.f32.mrf.mxu1 }
 0xedf   :  { %v1071_v44 = vpop.f32.mrf.mxu0  ;;  %v1115_v45 = vadd.f32 %v1114_v43, %v1068_v41 }
 0xee0   :  { %v2050_v46 = vpop.f32.mrf.mxu1 }
 0xee1   :  { %v1120_v49 = vadd.f32 %v1115_v45, %v2386_v48  ;;  %v2043_v50 = vpop.f32.mrf.mxu0 }
 0xee2   :  { %v1117_v51 = vpop.f32.mrf.mxu1 }
 0xee3   :  { %v1826_v52 = vmul.f32 -1.442695, %v1120_v49  ;;  %v1191_v53 = vpop.f32.mrf.mxu0 }
 0xee4   :  { %v1198_v54 = vrot.slane %v1191_v53, 6  ;;  %v2051_v55 = vpop.f32.mrf.mxu1 }
 0xee5   :  { %2195 = vpow2.f32 %v1826_v52  ;;  %v2058_v56 = vpop.f32.mrf.mxu0 }
 0xee6   :  { %v1200_v57 = vadd.f32 %v1198_v54, %v2337_v20 }
 0xee7   :  { %v1194_v58 = vpop.f32.mrf.mxu0 }
 0xee8   :  { %v1829_v59 = vmul.f32 -1.442695, %v1200_v57 }
 0xee9   :  { %v2059_v60 = vpop.f32.mrf.mxu0 }
 0xeea   :  { %2197 = vpow2.f32 %v1829_v59 }
 0xef2   :  { %v2196_v61 = vpop.eup %2195 }
 0xef3   :  { %v1124_v62 = vadd.f32 1.0, %v2196_v61 }
 0xef5   :  { %2199 = vrcp.f32 %v1124_v62 }
 0xef7   :  { %v2198_v63 = vpop.eup %2197 }
 0xef8   :  { %v1204_v1 = vadd.f32 1.0, %v2198_v63 }
 0xefa   :  { %2201 = vrcp.f32 %v1204_v1 }
 0xf02   :  { %v2200_v3 = vpop.eup %2199 }
 0xf03   :  { %v1127_v5 = vmul.f32 2.0, %v2200_v3  ;;  %v1129_v16 = vmul.f32 %v2200_v3, %v2524_v19 }
 0xf05   :  { %v1827_v6 = vadd.f32 -1.0, %v1127_v5 }
 0xf07   :  { %v2202_v7 = vpop.eup %2201  ;;  %1131 = vrot.lane.b32.xlu0 %v1827_v6, %s2267_s15 }
 0xf08   :  { %v1207_v10 = vmul.f32 2.0, %v2202_v7  ;;  %v1212_v25 = vmul.f32 %v2202_v7, %v1210_v22 }
 0xf0a   :  { %v1830_v11 = vadd.f32 -1.0, %v1207_v10 }
 0xf0c   :  { %1214 = vrot.lane.b32.xlu1 %v1830_v11, %s2267_s15 }
 0xf79   :  { %v1132_v13 = vpop.permute.xlu0 %1131 }
 0xf7a   :  { %v1134_v12 = vmul.f32 %v2200_v3, %v1132_v13 }
 0xf7c   :  { %1136 = vrot.lane.b32.xlu0 %v1134_v12, %s2272_s21 }
 0xf7e   :  { %v1215_v14 = vpop.permute.xlu1 %1214 }
 0xf7f   :  { %v1217_v15 = vmul.f32 %v2202_v7, %v1215_v14 }
 0xf81   :  { %1219 = vrot.lane.b32.xlu1 %v1217_v15, %s2272_s21 }
 0xfee   :  { %v1137_v17 = vpop.permute.xlu0 %1136 }
 0xfef   :  { %v2566_v18 = vadd.f32 %v1137_v17, %v1129_v16 }
 0xff1   :  { %2203 = vtanh.f32 %v2566_v18 }
 0xff3   :  { %v1220_v24 = vpop.permute.xlu1 %1219 }
 0xff4   :  { %v2570_v27 = vadd.f32 %v1220_v24, %v1212_v25 }
 0xff6   :  { %2205 = vtanh.f32 %v2570_v27  ;;  %v1413_v13 = vrot.slane %v2570_v27, 6 }
 0xffe   :  { %v2204_v23 = vpop.eup %2203 }
 0xfff   :  { %1142 = vrot.lane.b32.xlu0 %v2204_v23, %s2267_s15 }
0x1003   :  { %v2206_v28 = vpop.eup %2205 }
0x1004   :  { %1225 = vrot.lane.b32.xlu1 %v2206_v28, %s2267_s15 }
0x1071   :  { %v1143_v19 = vpop.permute.xlu0 %1142 }
0x1072   :  { %v2575_v32 = vmul.f32 %v2200_v3, %v1143_v19 }
0x1074   :  { %v1146_v29 = vpack.c.bf16 %v2575_v32, %v2575_v32 }
0x1076   :  { %v1226_v33 = vpop.permute.xlu1 %1225  ;;  %1231 = vrot.lane.b32.xlu0 %v1146_v29, %s2272_s21 }
0x1077   :  { %v1228_v38 = vmul.f32 %v2202_v7, %v1226_v33 }
0x1079   :  { %v1229_v39 = vpack.c.bf16 %v1228_v38, %v1228_v38 }
0x107b   :  { %v1277_v40 = vrot.slane %v1229_v39, 1  ;;  %v2237_v39 = vld [vmem:[#allocation2 + $0x18] sm:$0xff]  }
0x107d   :  { %1278 = vrot.lane.b32.xlu1 %v1277_v40, %s2272_s21 }
0x10e8   :  { %v1232_v41 = vpop.permute.xlu0 %1231 }
0x10e9   :  { %2065 = vmatmul.mubr.msk.bf16.vlgmr.msra.gmra.mxu1 %vm71_vm1, %v1232_v41  ;;  %v2238_v41 = vld [vmem:[#allocation2 + $0x38] sm:$0xff]  }
0x10ea   :  { %2077 = vmatpush3.bf16.msra.mxu1 %v2305_v2  ;;  %2080 = vmatprep.mubr.msk.bf16.mxu1 %vm2270_vm0, %v2269_v0 }
0x10eb   :  { %2078 = vmatprep.subr.bf16.mxu1 %v2269_v0 }
0x10ee   :  { %2079 = vmatpush3.bf16.msra.mxu1 %v2309_v4 }
0x10ef   :  { %v1279_v42 = vpop.permute.xlu1 %1278  ;;  %2092 = vmatprep.subr.bf16.mxu1 %v2269_v0 }
0x10f0   :  { %2073 = vmatmul.mubr.msk.bf16.vlgmr.msra.gmra.mxu0 %vm71_vm1, %v1279_v42 }
0x10f1   :  { %2081 = vmatmul.mubr.msk.bf16.vlgmr.msra.gmra.mxu1 %vm71_vm1, %v1279_v42  ;;  %2085 = vmatpush3.bf16.msra.mxu0 %v2344_v34  ;;  %v2239_v42 = vld [vmem:[#allocation2 + $0x10] sm:$0xff]  }
0x10f2   :  { %2086 = vmatprep.subr.bf16.mxu0 %v2269_v0  ;;  %2093 = vmatpush3.bf16.msra.mxu1 %v2346_v35 }
0x10f3   :  { %2088 = vmatprep.mubr.msk.bf16.mxu0 %vm2270_vm0, %v2269_v0  ;;  %2094 = vmatprep.subr.bf16.mxu1 %v2269_v0 }
0x10f4   :  { %2096 = vmatprep.mubr.msk.bf16.mxu1 %vm2270_vm0, %v2269_v0 }
0x10f5   :  { %2087 = vmatpush3.bf16.msra.mxu0 %v2349_v36 }
0x10f6   :  { %2100 = vmatprep.subr.bf16.mxu0 %v2269_v0  ;;  %2095 = vmatpush3.bf16.msra.mxu1 %v2352_v37 }
0x10f7   :  { %2108 = vmatprep.subr.bf16.mxu1 %v2269_v0 }
0x11a9   :  { %v1270_v2 = vpop.f32.mrf.mxu1 }
0x11ab   :  { %v2066_v4 = vpop.f32.mrf.mxu1 }
0x11ac   :  { %v2241_v4 = vld [vmem:[#allocation2 + $0x28] sm:$0xff]  }
0x11ad   :  { %v1273_v34 = vpop.f32.mrf.mxu1 }
0x11ae   :  { %v2242_v34 = vld [vmem:[#allocation2 + $0x20] sm:$0xff]  }
0x11af   :  { %v2067_v35 = vpop.f32.mrf.mxu1 }
0x11b0   :  { %v1317_v43 = vpop.f32.mrf.mxu0 }
0x11b1   :  { %v1318_v44 = vadd.f32 %v1317_v43, %v1270_v2  ;;  %v1394_v45 = vpop.f32.mrf.mxu1  ;;  %v2240_v2 = vld [vmem:[#allocation2 + $0x30] sm:$0xff]  }
0x11b2   :  { %v2074_v46 = vpop.f32.mrf.mxu0  ;;  %v1401_v49 = vrot.slane %v1394_v45, 4 }
0x11b3   :  { %v1323_v50 = vadd.f32 %v1318_v44, %v2386_v48  ;;  %v2082_v51 = vpop.f32.mrf.mxu1 }
0x11b4   :  { %v1403_v36 = vadd.f32 %v1401_v49, %v2337_v20  ;;  %v1320_v52 = vpop.f32.mrf.mxu0 }
0x11b5   :  { %v1833_v53 = vmul.f32 -1.442695, %v1323_v50  ;;  %v1397_v54 = vpop.f32.mrf.mxu1 }
0x11b6   :  { %v1836_v37 = vmul.f32 -1.442695, %v1403_v36  ;;  %v2075_v55 = vpop.f32.mrf.mxu0 }
0x11b7   :  { %2207 = vpow2.f32 %v1833_v53  ;;  %v2083_v56 = vpop.f32.mrf.mxu1 }
0x11b8   :  { %2209 = vpow2.f32 %v1836_v37 }
0x11c4   :  { %v2208_v57 = vpop.eup %2207 }
0x11c5   :  { %v2210_v58 = vpop.eup %2209  ;;  %v1327_v59 = vadd.f32 1.0, %v2208_v57 }
0x11c6   :  { %v1407_v60 = vadd.f32 1.0, %v2210_v58 }
0x11c7   :  { %2211 = vrcp.f32 %v1327_v59 }
0x11c8   :  { %2213 = vrcp.f32 %v1407_v60 }
0x11d4   :  { %v2212_v61 = vpop.eup %2211 }
0x11d5   :  { %v2214_v62 = vpop.eup %2213  ;;  %v1330_v63 = vmul.f32 2.0, %v2212_v61  ;;  %v1332_v12 = vmul.f32 %v2212_v61, %v2566_v18 }
0x11d6   :  { %v1410_v1 = vmul.f32 2.0, %v2214_v62  ;;  %v1415_v15 = vmul.f32 %v2214_v62, %v1413_v13 }
0x11d7   :  { %v1834_v3 = vadd.f32 -1.0, %v1330_v63 }
0x11d8   :  { %v1837_v5 = vadd.f32 -1.0, %v1410_v1 }
0x11d9   :  { %1334 = vrot.lane.b32.xlu0 %v1834_v3, %s2267_s15 }
0x11da   :  { %1417 = vrot.lane.b32.xlu1 %v1837_v5, %s2267_s15 }
0x124b   :  { %v1335_v6 = vpop.permute.xlu0 %1334 }
0x124c   :  { %v1337_v7 = vmul.f32 %v2212_v61, %v1335_v6  ;;  %v1418_v10 = vpop.permute.xlu1 %1417 }
0x124d   :  { %v1420_v11 = vmul.f32 %v2214_v62, %v1418_v10 }
0x124e   :  { %1339 = vrot.lane.b32.xlu0 %v1337_v7, %s2272_s21 }
0x124f   :  { %1422 = vrot.lane.b32.xlu1 %v1420_v11, %s2272_s21 }
0x12c0   :  { %v1340_v14 = vpop.permute.xlu0 %1339 }
0x12c1   :  { %v2610_v16 = vadd.f32 %v1340_v14, %v1332_v12  ;;  %v1423_v17 = vpop.permute.xlu1 %1422 }
0x12c2   :  { %v2612_v22 = vadd.f32 %v1423_v17, %v1415_v15 }
0x12c3   :  { %2215 = vtanh.f32 %v2610_v16 }
0x12c4   :  { %2217 = vtanh.f32 %v2612_v22  ;;  %v1616_v17 = vrot.slane %v2612_v22, 6 }
0x12d0   :  { %v2216_v25 = vpop.eup %2215 }
0x12d1   :  { %v2218_v24 = vpop.eup %2217  ;;  %1345 = vrot.lane.b32.xlu0 %v2216_v25, %s2267_s15 }
0x12d2   :  { %1428 = vrot.lane.b32.xlu1 %v2218_v24, %s2267_s15 }
0x1343   :  { %v1346_v27 = vpop.permute.xlu0 %1345 }
0x1344   :  { %v2618_v23 = vmul.f32 %v2212_v61, %v1346_v27  ;;  %v1429_v18 = vpop.permute.xlu1 %1428 }
0x1345   :  { %v1431_v28 = vmul.f32 %v2214_v62, %v1429_v18 }
0x1346   :  { %v1349_v19 = vpack.c.bf16 %v2618_v23, %v2618_v23 }
0x1347   :  { %v1432_v29 = vpack.c.bf16 %v1431_v28, %v1431_v28 }
0x1348   :  { %1434 = vrot.lane.b32.xlu0 %v1349_v19, %s2272_s21 }
0x1349   :  { %v1480_v33 = vrot.slane %v1432_v29, 2 }
0x134b   :  { %1481 = vrot.lane.b32.xlu1 %v1480_v33, %s2272_s21 }
0x13ba   :  { %v1435_v38 = vpop.permute.xlu0 %1434 }
0x13bb   :  { %2089 = vmatmul.mubr.msk.bf16.vlgmr.msra.gmra.mxu0 %vm71_vm1, %v1435_v38 }
0x13bc   :  { %2101 = vmatpush3.bf16.msra.mxu0 %v2237_v39  ;;  %2104 = vmatprep.mubr.msk.bf16.mxu0 %vm2270_vm0, %v2269_v0 }
0x13bd   :  { %v1482_v40 = vpop.permute.xlu1 %1481  ;;  %2102 = vmatprep.subr.bf16.mxu0 %v2269_v0 }
0x13be   :  { %2097 = vmatmul.mubr.msk.bf16.vlgmr.msra.gmra.mxu1 %vm71_vm1, %v1482_v40 }
0x13bf   :  { %2109 = vmatpush3.bf16.msra.mxu1 %v2238_v41  ;;  %2112 = vmatprep.mubr.msk.bf16.mxu1 %vm2270_vm0, %v2269_v0 }
0x13c0   :  { %2103 = vmatpush3.bf16.msra.mxu0 %v2239_v42  ;;  %2110 = vmatprep.subr.bf16.mxu1 %v2269_v0 }
0x13c1   :  { %2116 = vmatprep.subr.bf16.mxu0 %v2269_v0 }
0x13c3   :  { %2105 = vmatmul.mubr.msk.bf16.vlgmr.msra.gmra.mxu0 %vm71_vm1, %v1482_v40  ;;  %2111 = vmatpush3.bf16.msra.mxu1 %v2240_v2 }
0x13c4   :  { %2117 = vmatpush3.bf16.msra.mxu0 %v2241_v4  ;;  %2120 = vmatprep.mubr.msk.bf16.mxu0 %vm2270_vm0, %v2269_v0 }
0x13c5   :  { %2118 = vmatprep.subr.bf16.mxu0 %v2269_v0 }
0x13c8   :  { %2119 = vmatpush3.bf16.msra.mxu0 %v2242_v34 }
0x147b   :  { %v1473_v35 = vpop.f32.mrf.mxu0 }
0x147d   :  { %v2090_v43 = vpop.f32.mrf.mxu0 }
0x147e   :  { %v1520_v44 = vpop.f32.mrf.mxu1 }
0x147f   :  { %v1476_v45 = vpop.f32.mrf.mxu0  ;;  %v1521_v46 = vadd.f32 %v1520_v44, %v1473_v35 }
0x1480   :  { %v2098_v49 = vpop.f32.mrf.mxu1 }
0x1481   :  { %v1526_v50 = vadd.f32 %v1521_v46, %v2386_v48  ;;  %v2091_v51 = vpop.f32.mrf.mxu0 }
0x1482   :  { %v1523_v36 = vpop.f32.mrf.mxu1 }
0x1483   :  { %v1840_v52 = vmul.f32 -1.442695, %v1526_v50  ;;  %v1597_v53 = vpop.f32.mrf.mxu0 }
0x1484   :  { %v1604_v54 = vrot.slane %v1597_v53, 2  ;;  %v2099_v37 = vpop.f32.mrf.mxu1 }
0x1485   :  { %2219 = vpow2.f32 %v1840_v52  ;;  %v2106_v55 = vpop.f32.mrf.mxu0 }
0x1486   :  { %v1606_v0 = vadd.f32 %v1604_v54, %v2337_v20  ;;  %v341_v54 = vsub.s32 2, %v2323_v8  ;;  %v2243_v55 = vld [vmem:[%s2696_s2] sm:$0xff] }
0x1487   :  { %v1600_v56 = vpop.f32.mrf.mxu0 }
0x1488   :  { %v1843_v57 = vmul.f32 -1.442695, %v1606_v0  ;;  %v747_v0 = vsub.s32 4, %v2323_v8 }
0x1489   :  { %v2107_v58 = vpop.f32.mrf.mxu0 }
0x148a   :  { %2221 = vpow2.f32 %v1843_v57  ;;  %v748_v56 = vrot.slane %v2243_v55, %v747_v0  ;;  %v1149_v57 = vsub.s32 6, %v2323_v8 }
0x148c   :  { %v1150_v58 = vrot.slane %v2243_v55, %v1149_v57 }
0x1492   :  { %v2220_v59 = vpop.eup %2219 }
0x1493   :  { %v1530_v60 = vadd.f32 1.0, %v2220_v59  ;;  %v47_v59 = vld [vmem:[%s2696_s2 + $0x8] sm:$0x7] }
0x1495   :  { %2223 = vrcp.f32 %v1530_v60  ;;  %v1556_v60 = vrot.slane %v47_v59, %v52_v9 }
0x1497   :  { %v2222_v61 = vpop.eup %2221 }
0x1498   :  { %v1610_v62 = vadd.f32 1.0, %v2222_v61  ;;  %v544_v61 = vsub.s32 3, %v2323_v8 }
0x149a   :  { %2225 = vrcp.f32 %v1610_v62 }
0x14a2   :  { %v2224_v63 = vpop.eup %2223 }
0x14a3   :  { %v1533_v1 = vmul.f32 2.0, %v2224_v63  ;;  %v1535_v12 = vmul.f32 %v2224_v63, %v2610_v16 }
0x14a5   :  { %v1841_v3 = vadd.f32 -1.0, %v1533_v1  ;;  %v545_v1 = vrot.slane %v2243_v55, %v544_v61 }
0x14a7   :  { %v2226_v5 = vpop.eup %2225  ;;  %1537 = vrot.lane.b32.xlu1 %v1841_v3, %s2267_s15  ;;  %v950_v3 = vsub.s32 5, %v2323_v8 }
0x14a8   :  { %v1613_v6 = vmul.f32 2.0, %v2226_v5  ;;  %v1618_v25 = vmul.f32 %v2226_v5, %v1616_v17 }
0x14aa   :  { %v1844_v7 = vadd.f32 -1.0, %v1613_v6  ;;  %v951_v6 = vrot.slane %v2243_v55, %v950_v3 }
0x14ac   :  { %1620 = vrot.lane.b32.xlu0 %v1844_v7, %s2267_s15  ;;  %v1352_v7 = vsub.s32 7, %v2323_v8 }
0x14ae   :  { %v1353_v9 = vrot.slane %v2243_v55, %v1352_v7 }
0x1519   :  { %v1538_v20 = vpop.permute.xlu1 %1537 }
0x151a   :  { %v1540_v10 = vmul.f32 %v2224_v63, %v1538_v20 }
0x151c   :  { %1542 = vrot.lane.b32.xlu1 %v1540_v10, %s2272_s21 }
0x151e   :  { %v1621_v11 = vpop.permute.xlu0 %1620 }
0x151f   :  { %v1623_v13 = vmul.f32 %v2226_v5, %v1621_v11 }
0x1521   :  { %1625 = vrot.lane.b32.xlu0 %v1623_v13, %s2272_s21 }
0x158e   :  { %v1543_v14 = vpop.permute.xlu1 %1542 }
0x158f   :  { %v2644_v15 = vadd.f32 %v1543_v14, %v1535_v12 }
0x1591   :  { %2227 = vtanh.f32 %v2644_v15 }
0x1593   :  { %v1626_v24 = vpop.permute.xlu0 %1625 }
0x1594   :  { %v1628_v27 = vadd.f32 %v1626_v24, %v1618_v25 }
0x1596   :  { %2229 = vtanh.f32 %v1628_v27 }
0x159e   :  { %v2228_v18 = vpop.eup %2227 }
0x159f   :  { %1548 = vrot.lane.b32.xlu1 %v2228_v18, %s2267_s15 }
0x15a3   :  { %v2230_v28 = vpop.eup %2229 }
0x15a4   :  { %1631 = vrot.lane.b32.xlu0 %v2230_v28, %s2267_s15 }
0x1611   :  { %v1549_v19 = vpop.permute.xlu1 %1548 }
0x1612   :  { %v2650_v29 = vmul.f32 %v2224_v63, %v1549_v19 }
0x1614   :  { %v1552_v16 = vpack.c.bf16 %v2650_v29, %v2650_v29 }
0x1616   :  { %v1632_v33 = vpop.permute.xlu0 %1631  ;;  %1637 = vrot.lane.b32.xlu0 %v1552_v16, %s2272_s21 }
0x1617   :  { %v1634_v22 = vmul.f32 %v2226_v5, %v1632_v33  ;;  %v1758_v5 = vrot.slane %v47_v59, %v310_v47 }
0x1619   :  { %v1635_v38 = vpack.c.bf16 %v1634_v22, %v1634_v22 }
0x161b   :  { %v1683_v39 = vrot.slane %v1635_v38, 3 }
0x161d   :  { %1684 = vrot.lane.b32.xlu1 %v1683_v39, %s2272_s21 }
0x1688   :  { %v1638_v40 = vpop.permute.xlu0 %1637 }
0x1689   :  { %2113 = vmatmul.mubr.msk.bf16.vlgmr.msra.gmra.mxu1 %vm71_vm1, %v1638_v40 }
0x168f   :  { %v1685_v41 = vpop.permute.xlu1 %1684 }
0x1690   :  { %2121 = vmatmul.mubr.msk.bf16.vlgmr.msra.gmra.mxu0 %vm71_vm1, %v1685_v41 }
0x1749   :  { %v1676_v42 = vpop.f32.mrf.mxu1 }
0x174b   :  { %v2114_v2 = vpop.f32.mrf.mxu1 }
0x174d   :  { %v1679_v4 = vpop.f32.mrf.mxu1 }
0x174f   :  { %v2115_v34 = vpop.f32.mrf.mxu1 }
0x1750   :  { %v1723_v35 = vpop.f32.mrf.mxu0 }
0x1751   :  { %v1724_v43 = vadd.f32 %v1723_v35, %v1676_v42 }
0x1752   :  { %v2122_v44 = vpop.f32.mrf.mxu0 }
0x1753   :  { %v1729_v45 = vadd.f32 %v1724_v43, %v2386_v48  ;;  %v342_v48 = vrot.slane %v2243_v55, %v341_v54 }
0x1754   :  { %v1726_v46 = vpop.f32.mrf.mxu0 }
0x1755   :  { %v1847_v49 = vmul.f32 -1.442695, %v1729_v45 }
0x1756   :  { %v2123_v50 = vpop.f32.mrf.mxu0 }
0x1757   :  { %2231 = vpow2.f32 %v1847_v49 }
0x1764   :  { %v2232_v51 = vpop.eup %2231 }
0x1765   :  { %v1733_v36 = vadd.f32 1.0, %v2232_v51 }
0x1767   :  { %2233 = vrcp.f32 %v1733_v36 }
0x1774   :  { %v2234_v52 = vpop.eup %2233 }
0x1775   :  { %v1736_v53 = vmul.f32 2.0, %v2234_v52  ;;  %v1738_v20 = vmul.f32 %v2234_v52, %v2644_v15 }
0x1777   :  { %v1848_v37 = vadd.f32 -1.0, %v1736_v53 }
0x1779   :  { %1740 = vrot.lane.b32.xlu0 %v1848_v37, %s2267_s15 }
0x177d   :  { %344 = vrot.lane.b32.xlu0 %v342_v48, %s2273_s24 }
0x1781   :  { %750 = vrot.lane.b32.xlu0 %v748_v56, %s2273_s24 }
0x1785   :  { %1152 = vrot.lane.b32.xlu0 %v1150_v58, %s2273_s24 }
0x1789   :  { %1558 = vrot.lane.b32.xlu0 %v1556_v60, %s2273_s24 }
0x178d   :  { %1760 = vrot.lane.b32.xlu0 %v1758_v5, %s2273_s24 }
0x17eb   :  { %v1741_v62 = vpop.permute.xlu0 %1740 }
0x17ec   :  { %v1743_v63 = vmul.f32 %v2234_v52, %v1741_v62 }
0x17ee   :  { %1745 = vrot.lane.b32.xlu1 %v1743_v63, %s2272_s21 }
0x17ef   :  { %v345_v12 = vpop.permute.xlu0 %344 }
0x17f0   :  { %v347_v17 = vmul.f32 %v345_v12, %v2403_v30 }
0x17f2   :  { %547 = vrot.lane.b32.xlu1 %v545_v1, %s2273_s24 }
0x17f3   :  { %v751_v25 = vpop.permute.xlu0 %750 }
0x17f4   :  { %v753_v18 = vmul.f32 %v751_v25, %v2489_v26 }
0x17f6   :  { %953 = vrot.lane.b32.xlu1 %v951_v6, %s2273_s24 }
0x17f7   :  { %v1153_v19 = vpop.permute.xlu0 %1152 }
0x17f8   :  { %v1155_v22 = vmul.f32 %v1153_v19, %v2575_v32  ;;  %v1776_v32 = vrot.slane %v47_v59, %v341_v54 }
0x17fa   :  { %1355 = vrot.lane.b32.xlu1 %v1353_v9, %s2273_s24 }
0x17fb   :  { %v1559_v40 = vpop.permute.xlu0 %1558 }
0x17fc   :  { %v1561_v42 = vmul.f32 %v1559_v40, %v2650_v29 }
0x17ff   :  { %v1761_v30 = vpop.permute.xlu0 %1760 }
0x1860   :  { %v1746_v10 = vpop.permute.xlu1 %1745 }
0x1861   :  { %v1748_v11 = vadd.f32 %v1746_v10, %v1738_v20 }
0x1863   :  { %2235 = vtanh.f32 %v1748_v11 }
0x1864   :  { %v548_v14 = vpop.permute.xlu1 %547 }
0x1865   :  { %v550_v47 = vmul.f32 %v548_v14, %v2446_v31 }
0x1867   :  { %v551_v24 = vadd.f32 %v550_v47, %v347_v17 }
0x1868   :  { %v954_v27 = vpop.permute.xlu1 %953 }
0x1869   :  { %v754_v28 = vadd.f32 %v753_v18, %v551_v24  ;;  %v956_v15 = vmul.f32 %v954_v27, %v2532_v21 }
0x186b   :  { %v957_v16 = vadd.f32 %v956_v15, %v754_v28 }
0x186c   :  { %v1356_v33 = vpop.permute.xlu1 %1355 }
0x186d   :  { %v1156_v38 = vadd.f32 %v1155_v22, %v957_v16  ;;  %v1358_v39 = vmul.f32 %v1356_v33, %v2618_v23 }
0x186f   :  { %v1359_v31 = vadd.f32 %v1358_v39, %v1156_v38 }
0x1870   :  { %v2236_v13 = vpop.eup %2235 }
0x1871   :  { %1751 = vrot.lane.b32.xlu1 %v2236_v13, %s2267_s15  ;;  %v1562_v4 = vadd.f32 %v1561_v42, %v1359_v31 }
0x18e3   :  { %v1752_v41 = vpop.permute.xlu1 %1751 }
0x18e4   :  { %v1754_v2 = vmul.f32 %v2234_v52, %v1752_v41 }
0x18e6   :  { %v1763_v26 = vmul.f32 %v1761_v30, %v1754_v2 }
0x18e8   :  { %v1764_v34 = vadd.f32 %v1763_v26, %v1562_v4 }
0x18ea   :  { %1766 = vrot.lane.b32.xlu1 %v1764_v34, %s2272_s21 }
0x195c   :  { %v1767_v21 = vpop.permute.xlu1 %1766 }
0x195d   :  { %v1770_v35 = vsel %vm1769_vm2, %v1767_v21, 0.0 }
0x195e   :  { %1771 = vadd.xlane.f32.xlu0 %v1770_v35 }
0x19e7   :  { %v1772_v23 = vpop.xlane.xlu0 %1771 }
0x19e8   :  { %v1777_v43 = vadd.f32 %v1776_v32, %v1772_v23 }
0x19ea   :  { %1779 = vst.msk [vmem:[%s2697_s3] sm:$0x3] %vm1778_vm3, %v1777_v43 }
0x19eb   :  { %1784 = vsyncpa [#allocation3], 1 }

</bundles_post_ra>
